<compile_context>
chip_gen: v7x
topology: tpu7x:2x2x1
jax: 0.10.0
libtpu: 0.0.40
codegen_flags: <defaults>
</compile_context>

<pallas_src>
import functools

import jax
import jax.numpy as jnp
from jax.experimental import pallas as pl
from jax.experimental.pallas import tpu as pltpu


# ----------------------------------------------------------------------------
# In-kernel building blocks (traced inside the single fused kernel body)
# ----------------------------------------------------------------------------
def _conv_bn_relu_stage(z, w_ref, shift_ref, stride, padding, dilation):
    """One Conv1d -> BN(eval, folded into w) -> ReLU stage.

    z:         (L_in, B, C_in) f32 value (time-major, channel-last).
    w_ref:     (ks, C_in, C_out) bf16 ref, BN scale already folded in.
    shift_ref: (1, C_out) f32 ref, fused conv-bias + BN shift.
    Returns:   (L_out, B, C_out) f32.
    """
    ks, c_in, c_out = w_ref.shape
    L_in, B, _ = z.shape
    L_out = (L_in + 2 * padding - dilation * (ks - 1) - 1) // stride + 1

    # Zero-pad along L once per stage; round padded length up to a stride
    # multiple so the phase reshape below is exact (extra tail is never read).
    Lp = L_in + 2 * padding
    pad_hi_extra = (-Lp) % stride
    pad_lo, pad_hi = padding, padding + pad_hi_extra
    if pad_lo or pad_hi:
        pieces = []
        if pad_lo:
            pieces.append(jnp.zeros((pad_lo, B, c_in), z.dtype))
        pieces.append(z)
        if pad_hi:
            pieces.append(jnp.zeros((pad_hi, B, c_in), z.dtype))
        z = jnp.concatenate(pieces, axis=0)
    Lp_pad = Lp + pad_hi_extra

    # Hoisted stride-phase split: one reshape of the *leading* (untiled) dims
    # per stage; every tap below is then a plain leading-axis slice.
    if stride > 1:
        zs = z.reshape(Lp_pad // stride, stride, B, c_in)

    w = w_ref[...]                                         # (ks, C_in, C_out) bf16
    shift = shift_ref[...]                                 # (1, C_out) f32
    acc = None
    for k in range(ks):                                    # ks shifted-tap matmuls
        pos = k * dilation
        if stride > 1:
            xk = zs[pos // stride: pos // stride + L_out, pos % stride]
        else:
            xk = jax.lax.slice(z, (pos, 0, 0), (pos + L_out, B, c_in))
        a = xk.reshape(L_out * B, c_in).astype(jnp.bfloat16)   # bf16 MXU operand
        tap = jnp.dot(a, w[k], preferred_element_type=jnp.float32)
        acc = tap if acc is None else acc + tap

    out = jnp.maximum(acc + shift, 0.0)                    # f32 epilogue
    return out.reshape(L_out, B, c_out)


def _gru_cell(gi, h, wh_cat, b_hn, H):
    """One GRU step (PyTorch gate order r, z, n), fused-gate recurrence matmul.

    gi:     (B, 3H) f32, input projection (+ folded biases; n-gate has b_in only).
    h:      (B, H)  f32, previous hidden.
    wh_cat: (H, 3H) bf16 value, [W_hr | W_hz | W_hn] columns.
    b_hn:   (1, H)  f32 value.
    """
    # ONE MXU push per step instead of three; gates come out as lane blocks.
    gh = jnp.dot(h.astype(jnp.bfloat16), wh_cat, preferred_element_type=jnp.float32)
    r = jax.nn.sigmoid(gi[:, 0:H] + gh[:, 0:H])
    zg = jax.nn.sigmoid(gi[:, H:2 * H] + gh[:, H:2 * H])
    n = jnp.tanh(gi[:, 2 * H:3 * H] + r * (gh[:, 2 * H:3 * H] + b_hn))
    return (1.0 - zg) * n + zg * h


# ----------------------------------------------------------------------------
# The single fused kernel: conv stages -> skewed 2-layer GRU -> Linear(H, 1)
# ----------------------------------------------------------------------------
def _fused_forward_kernel(*refs, n_conv, stride, padding_ls, dilation_ls, hidden):
    x_ref = refs[0]
    conv_refs = refs[1:1 + 2 * n_conv]                      # (w, shift) per stage
    base = 1 + 2 * n_conv
    (wi1, wh1, gb1, bhn1,
     wi2, wh2, gb2, bhn2,
     fcw, fcb) = refs[base:base + 10]
    o_ref = refs[base + 10]

    H = hidden

    # ---- shared conv bottom (soft_share), kept in (L, B, C) layout ----
    z = x_ref[...]
    for s in range(n_conv):
        z = _conv_bn_relu_stage(z, conv_refs[2 * s], conv_refs[2 * s + 1],
                                stride, padding_ls[s], dilation_ls[s])

    # z is already time-major (T, B, C_last): torch.transpose(Z, 1, 2) is
    # absorbed by the layout choice, no data movement needed.
    T, B, c_in = z.shape

    # ---- layer-1 input projections hoisted: ONE fused-gate matmul over all t ----
    gi1 = (jnp.dot(z.reshape(T * B, c_in).astype(jnp.bfloat16), wi1[...],
                   preferred_element_type=jnp.float32) + gb1[...]).reshape(T, B, 3 * H)

    # Hoisted weight/bias loads (off the recurrence critical path).
    wh1_v, wh2_v = wh1[...], wh2[...]
    wi2_v = wi2[...]
    gb2_v = gb2[...]
    bhn1_v, bhn2_v = bhn1[...], bhn2[...]

    # ---- skewed 2-layer GRU: layer-2 step t issues right after h1_t ----
    h1 = jnp.zeros((B, H), jnp.float32)
    h2 = jnp.zeros((B, H), jnp.float32)
    for t in range(T):  # static unroll: T is small & known at trace time
        h1 = _gru_cell(gi1[t], h1, wh1_v, bhn1_v, H)
        # Layer-2 input projection cannot be hoisted (input is h1_t), but it is
        # one fused-gate matmul and is independent of layer-1 step t+1, so the
        # scheduler overlaps the two recurrences in the unrolled trace.
        gi2_t = jnp.dot(h1.astype(jnp.bfloat16), wi2_v,
                        preferred_element_type=jnp.float32) + gb2_v
        h2 = _gru_cell(gi2_t, h2, wh2_v, bhn2_v, H)

    # ---- fused Linear(hidden, 1) epilogue on the final layer-2 hidden ----
    out = jnp.dot(h2, fcw[...], preferred_element_type=jnp.float32) + fcb[0]
    o_ref[...] = out.astype(o_ref.dtype)


# ----------------------------------------------------------------------------
# Host-side parameter folding / layout prep + pallas_call wrapper
# ----------------------------------------------------------------------------
def _full_block_spec(shape):
    ndim = len(shape)
    return pl.BlockSpec(shape, lambda i, _n=ndim: (0,) * _n)


def _fold_conv_bn(stage, eps=1e-5):
    """Fold eval-mode BatchNorm1d (and the conv bias) into the conv weights."""
    scale = stage["gamma"] / jnp.sqrt(stage["var"] + eps)              # (C_out,)
    w_folded = stage["w"] * scale[:, None, None]                       # (C_out, C_in, ks)
    w_kernel = jnp.transpose(w_folded, (2, 1, 0)).astype(jnp.bfloat16)  # (ks, C_in, C_out)
    shift = ((stage["b"] - stage["mean"]) * scale + stage["beta"]).reshape(1, -1)
    return w_kernel, shift.astype(jnp.float32)


def _prep_gru_layer(w_ih, w_hh, b_ih, b_hh, hidden):
    """PyTorch GRU params (3H,in)/(3H,H)/(3H,) -> fused-gate kernel layout.

    Returns:
      wi_cat:    (C_in, 3H) bf16, columns [W_ir | W_iz | W_in]
      wh_cat:    (H, 3H)    bf16, columns [W_hr | W_hz | W_hn]
      gate_bias: (1, 3H)    f32, [b_ir+b_hr | b_iz+b_hz | b_in]
      b_hn:      (1, H)     f32 (stays inside r * (...))
    """
    H = hidden
    wi_cat = jnp.transpose(w_ih, (1, 0)).astype(jnp.bfloat16)
    wh_cat = jnp.transpose(w_hh, (1, 0)).astype(jnp.bfloat16)
    bi = b_ih.reshape(3, H)
    bh = b_hh.reshape(3, H)
    gate_bias = jnp.concatenate([bi[0] + bh[0], bi[1] + bh[1], bi[2]]
                                ).reshape(1, 3 * H).astype(jnp.float32)
    b_hn = bh[2].reshape(1, H).astype(jnp.float32)
    return wi_cat, wh_cat, gate_bias, b_hn


def rl_hard_share_forward(x_ncl, params, stride, padding_ls, dilation_ls, task, hidden):
    B = x_ncl.shape[0]
    n_conv = len(params["conv"])

    # (B, C, L) -> (L, B, C): time-major / channel-last for the fused kernel.
    x_lbc = jnp.transpose(x_ncl, (2, 0, 1)).astype(jnp.float32)

    conv_args = []
    for stage in params["conv"]:
        w_k, shift = _fold_conv_bn(stage)
        conv_args += [w_k, shift]

    tw = params["tower"][task]
    wi1, wh1, gb1, bhn1 = _prep_gru_layer(tw["w_ih0"], tw["w_hh0"], tw["b_ih0"], tw["b_hh0"], hidden)
    wi2, wh2, gb2, bhn2 = _prep_gru_layer(tw["w_ih1"], tw["w_hh1"], tw["b_ih1"], tw["b_hh1"], hidden)
    fc_w = tw["fc_w"].T.astype(jnp.float32)                  # (H, 1)
    fc_b = tw["fc_b"].reshape(1).astype(jnp.float32)         # scalar -> SMEM

    args = tuple([x_lbc] + conv_args
                 + [wi1, wh1, gb1, bhn1, wi2, wh2, gb2, bhn2, fc_w, fc_b])

    kernel = functools.partial(
        _fused_forward_kernel, n_conv=n_conv, stride=stride,
        padding_ls=tuple(padding_ls), dilation_ls=tuple(dilation_ls), hidden=hidden)

    in_specs = [_full_block_spec(a.shape) for a in args[:-1]]
    # fc bias is a single scalar: keep it in SMEM (no (8,128)-padded VMEM tile).
    in_specs.append(pl.BlockSpec(memory_space=pltpu.MemorySpace.SMEM))

    return pl.pallas_call(
        kernel,
        out_shape=jax.ShapeDtypeStruct((B, 1), jnp.float32),
        grid=(1,),
        in_specs=in_specs,
        out_specs=_full_block_spec((B, 1)),
        compiler_params=pltpu.CompilerParams(dimension_semantics=("arbitrary",)),
    )(*args)


# ----------------------------------------------------------------------------
# Deterministic synthetic parameters (PyTorch layouts / shapes)
# ----------------------------------------------------------------------------
def init_params(key, channel_ls, kernel_size, tower_width, tasks):
    counter = [0]

    def nrm(shape, scl=0.1):
        counter[0] += 1
        return scl * jax.random.normal(jax.random.fold_in(key, counter[0]), shape, jnp.float32)

    params = {"conv": [], "tower": {}}
    for i in range(len(channel_ls) - 1):
        c_in, c_out = channel_ls[i], channel_ls[i + 1]
        params["conv"].append({
            "w": nrm((c_out, c_in, kernel_size), 0.3),     # Conv1d.weight
            "b": nrm((c_out,), 0.1),                       # Conv1d.bias
            "gamma": 1.0 + nrm((c_out,), 0.1),             # BatchNorm1d.weight
            "beta": nrm((c_out,), 0.1),                    # BatchNorm1d.bias
            "mean": nrm((c_out,), 0.1),                    # running_mean
            "var": 1.0 + jnp.abs(nrm((c_out,), 0.1)),      # running_var
        })
    c_last = channel_ls[-1]
    H = tower_width
    for t in tasks:
        params["tower"][t] = {
            # nn.GRU params, PyTorch layout (3H, in) / (3H,), gate order r,z,n
            "w_ih0": nrm((3 * H, c_last), 0.2), "w_hh0": nrm((3 * H, H), 0.2),
            "b_ih0": nrm((3 * H,), 0.1), "b_hh0": nrm((3 * H,), 0.1),
            "w_ih1": nrm((3 * H, H), 0.2), "w_hh1": nrm((3 * H, H), 0.2),
            "b_ih1": nrm((3 * H,), 0.1), "b_hh1": nrm((3 * H,), 0.1),
            # nn.Linear(H, 1): weight (1, H), bias (1,)
            "fc_w": nrm((1, H), 0.2), "fc_b": nrm((1,), 0.1),
        }
    return params


if __name__ == "__main__":
    # conv_args = (channel_ls, kernel_size, stride, padding_ls, dilation_ls, pad_to)
    channel_ls = [4, 16, 32]
    kernel_size = 3
    stride = 2
    padding_ls = [1, 1]
    dilation_ls = [1, 1]
    pad_to = 16
    tower_width = 32
    tasks = ["unmod1", "human", "vleng"]
    task = "human"            # self.task must be set before forward in the PyTorch module
    B = 2

    key = jax.random.PRNGKey(0)
    params = init_params(key, channel_ls, kernel_size, tower_width, tasks)
    x = jax.random.normal(jax.random.fold_in(key, 12345), (B, channel_ls[0], pad_to), jnp.float32)

    out = rl_hard_share_forward(x, params, stride, padding_ls, dilation_ls, task, tower_width)
    out = jax.block_until_ready(out)
    assert out.shape == (B, 1), out.shape
    assert bool(jnp.all(jnp.isfinite(out)))
    print("KERNEL_OK")
</pallas_src>

<mosaic_0001>
module attributes {stable_mosaic.version = 11 : i64} {
  func.func @_fused_forward_kernel(%arg0: i32, %arg1: memref<16x2x4xf32, #tpu.memory_space<vmem>>, %arg2: memref<3x4x16xbf16, #tpu.memory_space<vmem>>, %arg3: memref<1x16xf32, #tpu.memory_space<vmem>>, %arg4: memref<3x16x32xbf16, #tpu.memory_space<vmem>>, %arg5: memref<1x32xf32, #tpu.memory_space<vmem>>, %arg6: memref<32x96xbf16, #tpu.memory_space<vmem>>, %arg7: memref<32x96xbf16, #tpu.memory_space<vmem>>, %arg8: memref<1x96xf32, #tpu.memory_space<vmem>>, %arg9: memref<1x32xf32, #tpu.memory_space<vmem>>, %arg10: memref<32x96xbf16, #tpu.memory_space<vmem>>, %arg11: memref<32x96xbf16, #tpu.memory_space<vmem>>, %arg12: memref<1x96xf32, #tpu.memory_space<vmem>>, %arg13: memref<1x32xf32, #tpu.memory_space<vmem>>, %arg14: memref<32x1xf32, #tpu.memory_space<vmem>>, %arg15: memref<1xf32, #tpu.memory_space<smem>>, %arg16: memref<2x1xf32, #tpu.memory_space<vmem>>) attributes {dimension_semantics = [#tpu.dimension_semantics<arbitrary>], iteration_bounds = array<i64: 1>, scalar_prefetch = 0 : i64, scratch_operands = 0 : i64, tpu.core_type = #tpu.core_type<tc>, window_params = [{pipeline_mode = #tpu.pipeline_mode<synchronous>, transform_indices = @transform_0, window_bounds = array<i64: 16, 2, 4>}, {pipeline_mode = #tpu.pipeline_mode<synchronous>, transform_indices = @transform_1, window_bounds = array<i64: 3, 4, 16>}, {pipeline_mode = #tpu.pipeline_mode<synchronous>, transform_indices = @transform_2, window_bounds = array<i64: 1, 16>}, {pipeline_mode = #tpu.pipeline_mode<synchronous>, transform_indices = @transform_3, window_bounds = array<i64: 3, 16, 32>}, {pipeline_mode = #tpu.pipeline_mode<synchronous>, transform_indices = @transform_4, window_bounds = array<i64: 1, 32>}, {pipeline_mode = #tpu.pipeline_mode<synchronous>, transform_indices = @transform_5, window_bounds = array<i64: 32, 96>}, {pipeline_mode = #tpu.pipeline_mode<synchronous>, transform_indices = @transform_6, window_bounds = array<i64: 32, 96>}, {pipeline_mode = #tpu.pipeline_mode<synchronous>, transform_indices = @transform_7, window_bounds = array<i64: 1, 96>}, {pipeline_mode = #tpu.pipeline_mode<synchronous>, transform_indices = @transform_8, window_bounds = array<i64: 1, 32>}, {pipeline_mode = #tpu.pipeline_mode<synchronous>, transform_indices = @transform_9, window_bounds = array<i64: 32, 96>}, {pipeline_mode = #tpu.pipeline_mode<synchronous>, transform_indices = @transform_10, window_bounds = array<i64: 32, 96>}, {pipeline_mode = #tpu.pipeline_mode<synchronous>, transform_indices = @transform_11, window_bounds = array<i64: 1, 96>}, {pipeline_mode = #tpu.pipeline_mode<synchronous>, transform_indices = @transform_12, window_bounds = array<i64: 1, 32>}, {pipeline_mode = #tpu.pipeline_mode<synchronous>, transform_indices = @transform_13, window_bounds = array<i64: 32, 1>}, {transform_indices = @transform_14, window_bounds = array<i64: 1>}, {pipeline_mode = #tpu.pipeline_mode<synchronous>, transform_indices = @transform_15, window_bounds = array<i64: 2, 1>}]} {
    %c0 = arith.constant 0 : index
    %c0_0 = arith.constant 0 : index
    %c0_1 = arith.constant 0 : index
    %0 = vector.load %arg1[%c0, %c0_0, %c0_1] : memref<16x2x4xf32, #tpu.memory_space<vmem>>, vector<16x2x4xf32>
    %cst = arith.constant 0.000000e+00 : f32
    %1 = vector.broadcast %cst : f32 to vector<1x2x4xf32>
    %cst_2 = arith.constant 0.000000e+00 : f32
    %2 = vector.broadcast %cst_2 : f32 to vector<1x2x4xf32>
    %3 = tpu.concatenate %1, %0, %2 in 0 : vector<1x2x4xf32>, vector<16x2x4xf32>, vector<1x2x4xf32> -> vector<18x2x4xf32>
    %4 = vector.shape_cast %3 : vector<18x2x4xf32> to vector<9x2x2x4xf32>
    %c0_3 = arith.constant 0 : index
    %c0_4 = arith.constant 0 : index
    %c0_5 = arith.constant 0 : index
    %5 = vector.load %arg2[%c0_3, %c0_4, %c0_5] : memref<3x4x16xbf16, #tpu.memory_space<vmem>>, vector<3x4x16xbf16>
    %c0_6 = arith.constant 0 : index
    %c0_7 = arith.constant 0 : index
    %6 = vector.load %arg3[%c0_6, %c0_7] : memref<1x16xf32, #tpu.memory_space<vmem>>, vector<1x16xf32>
    %7 = vector.extract_strided_slice %4 {offsets = [0, 0, 0, 0], sizes = [8, 1, 2, 4], strides = [1, 1, 1, 1]} : vector<9x2x2x4xf32> to vector<8x1x2x4xf32>
    %8 = vector.shape_cast %7 : vector<8x1x2x4xf32> to vector<8x2x4xf32>
    %9 = vector.shape_cast %8 : vector<8x2x4xf32> to vector<16x4xf32>
    %10 = arith.truncf %9 : vector<16x4xf32> to vector<16x4xbf16>
    %11 = vector.extract_strided_slice %5 {offsets = [0, 0, 0], sizes = [1, 4, 16], strides = [1, 1, 1]} : vector<3x4x16xbf16> to vector<1x4x16xbf16>
    %12 = vector.shape_cast %11 : vector<1x4x16xbf16> to vector<4x16xbf16>
    %cst_8 = arith.constant dense<0.000000e+00> : vector<16x16xf32>
    %13 = tpu.matmul %10, %12, %cst_8 {dimension_numbers = #tpu.dot_dimension_numbers<[1], [0], [0], [1], [0, 0, 1, 1], [], []>} : vector<16x4xbf16>, vector<4x16xbf16>, vector<16x16xf32> -> vector<16x16xf32>
    %14 = vector.extract_strided_slice %4 {offsets = [0, 1, 0, 0], sizes = [8, 1, 2, 4], strides = [1, 1, 1, 1]} : vector<9x2x2x4xf32> to vector<8x1x2x4xf32>
    %15 = vector.shape_cast %14 : vector<8x1x2x4xf32> to vector<8x2x4xf32>
    %16 = vector.shape_cast %15 : vector<8x2x4xf32> to vector<16x4xf32>
    %17 = arith.truncf %16 : vector<16x4xf32> to vector<16x4xbf16>
    %18 = vector.extract_strided_slice %5 {offsets = [1, 0, 0], sizes = [1, 4, 16], strides = [1, 1, 1]} : vector<3x4x16xbf16> to vector<1x4x16xbf16>
    %19 = vector.shape_cast %18 : vector<1x4x16xbf16> to vector<4x16xbf16>
    %cst_9 = arith.constant dense<0.000000e+00> : vector<16x16xf32>
    %20 = tpu.matmul %17, %19, %cst_9 {dimension_numbers = #tpu.dot_dimension_numbers<[1], [0], [0], [1], [0, 0, 1, 1], [], []>} : vector<16x4xbf16>, vector<4x16xbf16>, vector<16x16xf32> -> vector<16x16xf32>
    %21 = arith.addf %13, %20 : vector<16x16xf32>
    %22 = vector.extract_strided_slice %4 {offsets = [1, 0, 0, 0], sizes = [8, 1, 2, 4], strides = [1, 1, 1, 1]} : vector<9x2x2x4xf32> to vector<8x1x2x4xf32>
    %23 = vector.shape_cast %22 : vector<8x1x2x4xf32> to vector<8x2x4xf32>
    %24 = vector.shape_cast %23 : vector<8x2x4xf32> to vector<16x4xf32>
    %25 = arith.truncf %24 : vector<16x4xf32> to vector<16x4xbf16>
    %26 = vector.extract_strided_slice %5 {offsets = [2, 0, 0], sizes = [1, 4, 16], strides = [1, 1, 1]} : vector<3x4x16xbf16> to vector<1x4x16xbf16>
    %27 = vector.shape_cast %26 : vector<1x4x16xbf16> to vector<4x16xbf16>
    %cst_10 = arith.constant dense<0.000000e+00> : vector<16x16xf32>
    %28 = tpu.matmul %25, %27, %cst_10 {dimension_numbers = #tpu.dot_dimension_numbers<[1], [0], [0], [1], [0, 0, 1, 1], [], []>} : vector<16x4xbf16>, vector<4x16xbf16>, vector<16x16xf32> -> vector<16x16xf32>
    %29 = arith.addf %21, %28 : vector<16x16xf32>
    %30 = vector.broadcast %6 : vector<1x16xf32> to vector<16x16xf32>
    %31 = arith.addf %29, %30 : vector<16x16xf32>
    %cst_11 = arith.constant 0.000000e+00 : f32
    %32 = vector.broadcast %cst_11 : f32 to vector<16x16xf32>
    %33 = arith.maximumf %31, %32 : vector<16x16xf32>
    %34 = vector.shape_cast %33 : vector<16x16xf32> to vector<8x2x16xf32>
    %cst_12 = arith.constant 0.000000e+00 : f32
    %35 = vector.broadcast %cst_12 : f32 to vector<1x2x16xf32>
    %cst_13 = arith.constant 0.000000e+00 : f32
    %36 = vector.broadcast %cst_13 : f32 to vector<1x2x16xf32>
    %37 = tpu.concatenate %35, %34, %36 in 0 : vector<1x2x16xf32>, vector<8x2x16xf32>, vector<1x2x16xf32> -> vector<10x2x16xf32>
    %38 = vector.shape_cast %37 : vector<10x2x16xf32> to vector<5x2x2x16xf32>
    %c0_14 = arith.constant 0 : index
    %c0_15 = arith.constant 0 : index
    %c0_16 = arith.constant 0 : index
    %39 = vector.load %arg4[%c0_14, %c0_15, %c0_16] : memref<3x16x32xbf16, #tpu.memory_space<vmem>>, vector<3x16x32xbf16>
    %c0_17 = arith.constant 0 : index
    %c0_18 = arith.constant 0 : index
    %40 = vector.load %arg5[%c0_17, %c0_18] : memref<1x32xf32, #tpu.memory_space<vmem>>, vector<1x32xf32>
    %41 = vector.extract_strided_slice %38 {offsets = [0, 0, 0, 0], sizes = [4, 1, 2, 16], strides = [1, 1, 1, 1]} : vector<5x2x2x16xf32> to vector<4x1x2x16xf32>
    %42 = vector.shape_cast %41 : vector<4x1x2x16xf32> to vector<4x2x16xf32>
    %43 = vector.shape_cast %42 : vector<4x2x16xf32> to vector<8x16xf32>
    %44 = arith.truncf %43 : vector<8x16xf32> to vector<8x16xbf16>
    %45 = vector.extract_strided_slice %39 {offsets = [0, 0, 0], sizes = [1, 16, 32], strides = [1, 1, 1]} : vector<3x16x32xbf16> to vector<1x16x32xbf16>
    %46 = vector.shape_cast %45 : vector<1x16x32xbf16> to vector<16x32xbf16>
    %cst_19 = arith.constant dense<0.000000e+00> : vector<8x32xf32>
    %47 = tpu.matmul %44, %46, %cst_19 {dimension_numbers = #tpu.dot_dimension_numbers<[1], [0], [0], [1], [0, 0, 1, 1], [], []>} : vector<8x16xbf16>, vector<16x32xbf16>, vector<8x32xf32> -> vector<8x32xf32>
    %48 = vector.extract_strided_slice %38 {offsets = [0, 1, 0, 0], sizes = [4, 1, 2, 16], strides = [1, 1, 1, 1]} : vector<5x2x2x16xf32> to vector<4x1x2x16xf32>
    %49 = vector.shape_cast %48 : vector<4x1x2x16xf32> to vector<4x2x16xf32>
    %50 = vector.shape_cast %49 : vector<4x2x16xf32> to vector<8x16xf32>
    %51 = arith.truncf %50 : vector<8x16xf32> to vector<8x16xbf16>
    %52 = vector.extract_strided_slice %39 {offsets = [1, 0, 0], sizes = [1, 16, 32], strides = [1, 1, 1]} : vector<3x16x32xbf16> to vector<1x16x32xbf16>
    %53 = vector.shape_cast %52 : vector<1x16x32xbf16> to vector<16x32xbf16>
    %cst_20 = arith.constant dense<0.000000e+00> : vector<8x32xf32>
    %54 = tpu.matmul %51, %53, %cst_20 {dimension_numbers = #tpu.dot_dimension_numbers<[1], [0], [0], [1], [0, 0, 1, 1], [], []>} : vector<8x16xbf16>, vector<16x32xbf16>, vector<8x32xf32> -> vector<8x32xf32>
    %55 = arith.addf %47, %54 : vector<8x32xf32>
    %56 = vector.extract_strided_slice %38 {offsets = [1, 0, 0, 0], sizes = [4, 1, 2, 16], strides = [1, 1, 1, 1]} : vector<5x2x2x16xf32> to vector<4x1x2x16xf32>
    %57 = vector.shape_cast %56 : vector<4x1x2x16xf32> to vector<4x2x16xf32>
    %58 = vector.shape_cast %57 : vector<4x2x16xf32> to vector<8x16xf32>
    %59 = arith.truncf %58 : vector<8x16xf32> to vector<8x16xbf16>
    %60 = vector.extract_strided_slice %39 {offsets = [2, 0, 0], sizes = [1, 16, 32], strides = [1, 1, 1]} : vector<3x16x32xbf16> to vector<1x16x32xbf16>
    %61 = vector.shape_cast %60 : vector<1x16x32xbf16> to vector<16x32xbf16>
    %cst_21 = arith.constant dense<0.000000e+00> : vector<8x32xf32>
    %62 = tpu.matmul %59, %61, %cst_21 {dimension_numbers = #tpu.dot_dimension_numbers<[1], [0], [0], [1], [0, 0, 1, 1], [], []>} : vector<8x16xbf16>, vector<16x32xbf16>, vector<8x32xf32> -> vector<8x32xf32>
    %63 = arith.addf %55, %62 : vector<8x32xf32>
    %64 = vector.broadcast %40 : vector<1x32xf32> to vector<8x32xf32>
    %65 = arith.addf %63, %64 : vector<8x32xf32>
    %cst_22 = arith.constant 0.000000e+00 : f32
    %66 = vector.broadcast %cst_22 : f32 to vector<8x32xf32>
    %67 = arith.maximumf %65, %66 : vector<8x32xf32>
    %68 = vector.shape_cast %67 : vector<8x32xf32> to vector<4x2x32xf32>
    %69 = vector.shape_cast %68 : vector<4x2x32xf32> to vector<8x32xf32>
    %70 = arith.truncf %69 : vector<8x32xf32> to vector<8x32xbf16>
    %c0_23 = arith.constant 0 : index
    %c0_24 = arith.constant 0 : index
    %71 = vector.load %arg6[%c0_23, %c0_24] : memref<32x96xbf16, #tpu.memory_space<vmem>>, vector<32x96xbf16>
    %cst_25 = arith.constant dense<0.000000e+00> : vector<8x96xf32>
    %72 = tpu.matmul %70, %71, %cst_25 {dimension_numbers = #tpu.dot_dimension_numbers<[1], [0], [0], [1], [0, 0, 1, 1], [], []>} : vector<8x32xbf16>, vector<32x96xbf16>, vector<8x96xf32> -> vector<8x96xf32>
    %c0_26 = arith.constant 0 : index
    %c0_27 = arith.constant 0 : index
    %73 = vector.load %arg8[%c0_26, %c0_27] : memref<1x96xf32, #tpu.memory_space<vmem>>, vector<1x96xf32>
    %74 = vector.broadcast %73 : vector<1x96xf32> to vector<8x96xf32>
    %75 = arith.addf %72, %74 : vector<8x96xf32>
    %76 = vector.shape_cast %75 : vector<8x96xf32> to vector<4x2x96xf32>
    %c0_28 = arith.constant 0 : index
    %c0_29 = arith.constant 0 : index
    %77 = vector.load %arg7[%c0_28, %c0_29] : memref<32x96xbf16, #tpu.memory_space<vmem>>, vector<32x96xbf16>
    %c0_30 = arith.constant 0 : index
    %c0_31 = arith.constant 0 : index
    %78 = vector.load %arg11[%c0_30, %c0_31] : memref<32x96xbf16, #tpu.memory_space<vmem>>, vector<32x96xbf16>
    %c0_32 = arith.constant 0 : index
    %c0_33 = arith.constant 0 : index
    %79 = vector.load %arg10[%c0_32, %c0_33] : memref<32x96xbf16, #tpu.memory_space<vmem>>, vector<32x96xbf16>
    %c0_34 = arith.constant 0 : index
    %c0_35 = arith.constant 0 : index
    %80 = vector.load %arg12[%c0_34, %c0_35] : memref<1x96xf32, #tpu.memory_space<vmem>>, vector<1x96xf32>
    %c0_36 = arith.constant 0 : index
    %c0_37 = arith.constant 0 : index
    %81 = vector.load %arg9[%c0_36, %c0_37] : memref<1x32xf32, #tpu.memory_space<vmem>>, vector<1x32xf32>
    %c0_38 = arith.constant 0 : index
    %c0_39 = arith.constant 0 : index
    %82 = vector.load %arg13[%c0_38, %c0_39] : memref<1x32xf32, #tpu.memory_space<vmem>>, vector<1x32xf32>
    %cst_40 = arith.constant 0.000000e+00 : f32
    %83 = vector.broadcast %cst_40 : f32 to vector<2x32xf32>
    %cst_41 = arith.constant 0.000000e+00 : f32
    %84 = vector.broadcast %cst_41 : f32 to vector<2x32xf32>
    %85 = vector.extract_strided_slice %76 {offsets = [0, 0, 0], sizes = [1, 2, 96], strides = [1, 1, 1]} : vector<4x2x96xf32> to vector<1x2x96xf32>
    %86 = vector.shape_cast %85 : vector<1x2x96xf32> to vector<2x96xf32>
    %87 = arith.truncf %83 : vector<2x32xf32> to vector<2x32xbf16>
    %cst_42 = arith.constant dense<0.000000e+00> : vector<2x96xf32>
    %88 = tpu.matmul %87, %77, %cst_42 {dimension_numbers = #tpu.dot_dimension_numbers<[1], [0], [0], [1], [0, 0, 1, 1], [], []>} : vector<2x32xbf16>, vector<32x96xbf16>, vector<2x96xf32> -> vector<2x96xf32>
    %89 = vector.extract_strided_slice %86 {offsets = [0, 0], sizes = [2, 32], strides = [1, 1]} : vector<2x96xf32> to vector<2x32xf32>
    %90 = vector.extract_strided_slice %88 {offsets = [0, 0], sizes = [2, 32], strides = [1, 1]} : vector<2x96xf32> to vector<2x32xf32>
    %91 = arith.addf %89, %90 : vector<2x32xf32>
    %92 = arith.negf %91 : vector<2x32xf32>
    %93 = math.exp %92 : vector<2x32xf32>
    %cst_43 = arith.constant 1.000000e+00 : f32
    %94 = vector.broadcast %cst_43 : f32 to vector<2x32xf32>
    %95 = arith.addf %94, %93 : vector<2x32xf32>
    %96 = arith.divf %94, %95 : vector<2x32xf32>
    %97 = vector.extract_strided_slice %86 {offsets = [0, 32], sizes = [2, 32], strides = [1, 1]} : vector<2x96xf32> to vector<2x32xf32>
    %98 = vector.extract_strided_slice %88 {offsets = [0, 32], sizes = [2, 32], strides = [1, 1]} : vector<2x96xf32> to vector<2x32xf32>
    %99 = arith.addf %97, %98 : vector<2x32xf32>
    %100 = arith.negf %99 : vector<2x32xf32>
    %101 = math.exp %100 : vector<2x32xf32>
    %cst_44 = arith.constant 1.000000e+00 : f32
    %102 = vector.broadcast %cst_44 : f32 to vector<2x32xf32>
    %103 = arith.addf %102, %101 : vector<2x32xf32>
    %104 = arith.divf %102, %103 : vector<2x32xf32>
    %105 = vector.extract_strided_slice %86 {offsets = [0, 64], sizes = [2, 32], strides = [1, 1]} : vector<2x96xf32> to vector<2x32xf32>
    %106 = vector.extract_strided_slice %88 {offsets = [0, 64], sizes = [2, 32], strides = [1, 1]} : vector<2x96xf32> to vector<2x32xf32>
    %107 = vector.broadcast %81 : vector<1x32xf32> to vector<2x32xf32>
    %108 = arith.addf %106, %107 : vector<2x32xf32>
    %109 = arith.mulf %96, %108 : vector<2x32xf32>
    %110 = arith.addf %105, %109 : vector<2x32xf32>
    %111 = math.tanh %110 : vector<2x32xf32>
    %cst_45 = arith.constant 1.000000e+00 : f32
    %112 = vector.broadcast %cst_45 : f32 to vector<2x32xf32>
    %113 = arith.subf %112, %104 : vector<2x32xf32>
    %114 = arith.mulf %113, %111 : vector<2x32xf32>
    %115 = arith.mulf %104, %83 : vector<2x32xf32>
    %116 = arith.addf %114, %115 : vector<2x32xf32>
    %117 = arith.truncf %116 : vector<2x32xf32> to vector<2x32xbf16>
    %cst_46 = arith.constant dense<0.000000e+00> : vector<2x96xf32>
    %118 = tpu.matmul %117, %79, %cst_46 {dimension_numbers = #tpu.dot_dimension_numbers<[1], [0], [0], [1], [0, 0, 1, 1], [], []>} : vector<2x32xbf16>, vector<32x96xbf16>, vector<2x96xf32> -> vector<2x96xf32>
    %119 = vector.broadcast %80 : vector<1x96xf32> to vector<2x96xf32>
    %120 = arith.addf %118, %119 : vector<2x96xf32>
    %121 = arith.truncf %84 : vector<2x32xf32> to vector<2x32xbf16>
    %cst_47 = arith.constant dense<0.000000e+00> : vector<2x96xf32>
    %122 = tpu.matmul %121, %78, %cst_47 {dimension_numbers = #tpu.dot_dimension_numbers<[1], [0], [0], [1], [0, 0, 1, 1], [], []>} : vector<2x32xbf16>, vector<32x96xbf16>, vector<2x96xf32> -> vector<2x96xf32>
    %123 = vector.extract_strided_slice %120 {offsets = [0, 0], sizes = [2, 32], strides = [1, 1]} : vector<2x96xf32> to vector<2x32xf32>
    %124 = vector.extract_strided_slice %122 {offsets = [0, 0], sizes = [2, 32], strides = [1, 1]} : vector<2x96xf32> to vector<2x32xf32>
    %125 = arith.addf %123, %124 : vector<2x32xf32>
    %126 = arith.negf %125 : vector<2x32xf32>
    %127 = math.exp %126 : vector<2x32xf32>
    %cst_48 = arith.constant 1.000000e+00 : f32
    %128 = vector.broadcast %cst_48 : f32 to vector<2x32xf32>
    %129 = arith.addf %128, %127 : vector<2x32xf32>
    %130 = arith.divf %128, %129 : vector<2x32xf32>
    %131 = vector.extract_strided_slice %120 {offsets = [0, 32], sizes = [2, 32], strides = [1, 1]} : vector<2x96xf32> to vector<2x32xf32>
    %132 = vector.extract_strided_slice %122 {offsets = [0, 32], sizes = [2, 32], strides = [1, 1]} : vector<2x96xf32> to vector<2x32xf32>
    %133 = arith.addf %131, %132 : vector<2x32xf32>
    %134 = arith.negf %133 : vector<2x32xf32>
    %135 = math.exp %134 : vector<2x32xf32>
    %cst_49 = arith.constant 1.000000e+00 : f32
    %136 = vector.broadcast %cst_49 : f32 to vector<2x32xf32>
    %137 = arith.addf %136, %135 : vector<2x32xf32>
    %138 = arith.divf %136, %137 : vector<2x32xf32>
    %139 = vector.extract_strided_slice %120 {offsets = [0, 64], sizes = [2, 32], strides = [1, 1]} : vector<2x96xf32> to vector<2x32xf32>
    %140 = vector.extract_strided_slice %122 {offsets = [0, 64], sizes = [2, 32], strides = [1, 1]} : vector<2x96xf32> to vector<2x32xf32>
    %141 = vector.broadcast %82 : vector<1x32xf32> to vector<2x32xf32>
    %142 = arith.addf %140, %141 : vector<2x32xf32>
    %143 = arith.mulf %130, %142 : vector<2x32xf32>
    %144 = arith.addf %139, %143 : vector<2x32xf32>
    %145 = math.tanh %144 : vector<2x32xf32>
    %cst_50 = arith.constant 1.000000e+00 : f32
    %146 = vector.broadcast %cst_50 : f32 to vector<2x32xf32>
    %147 = arith.subf %146, %138 : vector<2x32xf32>
    %148 = arith.mulf %147, %145 : vector<2x32xf32>
    %149 = arith.mulf %138, %84 : vector<2x32xf32>
    %150 = arith.addf %148, %149 : vector<2x32xf32>
    %151 = vector.extract_strided_slice %76 {offsets = [1, 0, 0], sizes = [1, 2, 96], strides = [1, 1, 1]} : vector<4x2x96xf32> to vector<1x2x96xf32>
    %152 = vector.shape_cast %151 : vector<1x2x96xf32> to vector<2x96xf32>
    %153 = arith.truncf %116 : vector<2x32xf32> to vector<2x32xbf16>
    %cst_51 = arith.constant dense<0.000000e+00> : vector<2x96xf32>
    %154 = tpu.matmul %153, %77, %cst_51 {dimension_numbers = #tpu.dot_dimension_numbers<[1], [0], [0], [1], [0, 0, 1, 1], [], []>} : vector<2x32xbf16>, vector<32x96xbf16>, vector<2x96xf32> -> vector<2x96xf32>
    %155 = vector.extract_strided_slice %152 {offsets = [0, 0], sizes = [2, 32], strides = [1, 1]} : vector<2x96xf32> to vector<2x32xf32>
    %156 = vector.extract_strided_slice %154 {offsets = [0, 0], sizes = [2, 32], strides = [1, 1]} : vector<2x96xf32> to vector<2x32xf32>
    %157 = arith.addf %155, %156 : vector<2x32xf32>
    %158 = arith.negf %157 : vector<2x32xf32>
    %159 = math.exp %158 : vector<2x32xf32>
    %cst_52 = arith.constant 1.000000e+00 : f32
    %160 = vector.broadcast %cst_52 : f32 to vector<2x32xf32>
    %161 = arith.addf %160, %159 : vector<2x32xf32>
    %162 = arith.divf %160, %161 : vector<2x32xf32>
    %163 = vector.extract_strided_slice %152 {offsets = [0, 32], sizes = [2, 32], strides = [1, 1]} : vector<2x96xf32> to vector<2x32xf32>
    %164 = vector.extract_strided_slice %154 {offsets = [0, 32], sizes = [2, 32], strides = [1, 1]} : vector<2x96xf32> to vector<2x32xf32>
    %165 = arith.addf %163, %164 : vector<2x32xf32>
    %166 = arith.negf %165 : vector<2x32xf32>
    %167 = math.exp %166 : vector<2x32xf32>
    %cst_53 = arith.constant 1.000000e+00 : f32
    %168 = vector.broadcast %cst_53 : f32 to vector<2x32xf32>
    %169 = arith.addf %168, %167 : vector<2x32xf32>
    %170 = arith.divf %168, %169 : vector<2x32xf32>
    %171 = vector.extract_strided_slice %152 {offsets = [0, 64], sizes = [2, 32], strides = [1, 1]} : vector<2x96xf32> to vector<2x32xf32>
    %172 = vector.extract_strided_slice %154 {offsets = [0, 64], sizes = [2, 32], strides = [1, 1]} : vector<2x96xf32> to vector<2x32xf32>
    %173 = vector.broadcast %81 : vector<1x32xf32> to vector<2x32xf32>
    %174 = arith.addf %172, %173 : vector<2x32xf32>
    %175 = arith.mulf %162, %174 : vector<2x32xf32>
    %176 = arith.addf %171, %175 : vector<2x32xf32>
    %177 = math.tanh %176 : vector<2x32xf32>
    %cst_54 = arith.constant 1.000000e+00 : f32
    %178 = vector.broadcast %cst_54 : f32 to vector<2x32xf32>
    %179 = arith.subf %178, %170 : vector<2x32xf32>
    %180 = arith.mulf %179, %177 : vector<2x32xf32>
    %181 = arith.mulf %170, %116 : vector<2x32xf32>
    %182 = arith.addf %180, %181 : vector<2x32xf32>
    %183 = arith.truncf %182 : vector<2x32xf32> to vector<2x32xbf16>
    %cst_55 = arith.constant dense<0.000000e+00> : vector<2x96xf32>
    %184 = tpu.matmul %183, %79, %cst_55 {dimension_numbers = #tpu.dot_dimension_numbers<[1], [0], [0], [1], [0, 0, 1, 1], [], []>} : vector<2x32xbf16>, vector<32x96xbf16>, vector<2x96xf32> -> vector<2x96xf32>
    %185 = vector.broadcast %80 : vector<1x96xf32> to vector<2x96xf32>
    %186 = arith.addf %184, %185 : vector<2x96xf32>
    %187 = arith.truncf %150 : vector<2x32xf32> to vector<2x32xbf16>
    %cst_56 = arith.constant dense<0.000000e+00> : vector<2x96xf32>
    %188 = tpu.matmul %187, %78, %cst_56 {dimension_numbers = #tpu.dot_dimension_numbers<[1], [0], [0], [1], [0, 0, 1, 1], [], []>} : vector<2x32xbf16>, vector<32x96xbf16>, vector<2x96xf32> -> vector<2x96xf32>
    %189 = vector.extract_strided_slice %186 {offsets = [0, 0], sizes = [2, 32], strides = [1, 1]} : vector<2x96xf32> to vector<2x32xf32>
    %190 = vector.extract_strided_slice %188 {offsets = [0, 0], sizes = [2, 32], strides = [1, 1]} : vector<2x96xf32> to vector<2x32xf32>
    %191 = arith.addf %189, %190 : vector<2x32xf32>
    %192 = arith.negf %191 : vector<2x32xf32>
    %193 = math.exp %192 : vector<2x32xf32>
    %cst_57 = arith.constant 1.000000e+00 : f32
    %194 = vector.broadcast %cst_57 : f32 to vector<2x32xf32>
    %195 = arith.addf %194, %193 : vector<2x32xf32>
    %196 = arith.divf %194, %195 : vector<2x32xf32>
    %197 = vector.extract_strided_slice %186 {offsets = [0, 32], sizes = [2, 32], strides = [1, 1]} : vector<2x96xf32> to vector<2x32xf32>
    %198 = vector.extract_strided_slice %188 {offsets = [0, 32], sizes = [2, 32], strides = [1, 1]} : vector<2x96xf32> to vector<2x32xf32>
    %199 = arith.addf %197, %198 : vector<2x32xf32>
    %200 = arith.negf %199 : vector<2x32xf32>
    %201 = math.exp %200 : vector<2x32xf32>
    %cst_58 = arith.constant 1.000000e+00 : f32
    %202 = vector.broadcast %cst_58 : f32 to vector<2x32xf32>
    %203 = arith.addf %202, %201 : vector<2x32xf32>
    %204 = arith.divf %202, %203 : vector<2x32xf32>
    %205 = vector.extract_strided_slice %186 {offsets = [0, 64], sizes = [2, 32], strides = [1, 1]} : vector<2x96xf32> to vector<2x32xf32>
    %206 = vector.extract_strided_slice %188 {offsets = [0, 64], sizes = [2, 32], strides = [1, 1]} : vector<2x96xf32> to vector<2x32xf32>
    %207 = vector.broadcast %82 : vector<1x32xf32> to vector<2x32xf32>
    %208 = arith.addf %206, %207 : vector<2x32xf32>
    %209 = arith.mulf %196, %208 : vector<2x32xf32>
    %210 = arith.addf %205, %209 : vector<2x32xf32>
    %211 = math.tanh %210 : vector<2x32xf32>
    %cst_59 = arith.constant 1.000000e+00 : f32
    %212 = vector.broadcast %cst_59 : f32 to vector<2x32xf32>
    %213 = arith.subf %212, %204 : vector<2x32xf32>
    %214 = arith.mulf %213, %211 : vector<2x32xf32>
    %215 = arith.mulf %204, %150 : vector<2x32xf32>
    %216 = arith.addf %214, %215 : vector<2x32xf32>
    %217 = vector.extract_strided_slice %76 {offsets = [2, 0, 0], sizes = [1, 2, 96], strides = [1, 1, 1]} : vector<4x2x96xf32> to vector<1x2x96xf32>
    %218 = vector.shape_cast %217 : vector<1x2x96xf32> to vector<2x96xf32>
    %219 = arith.truncf %182 : vector<2x32xf32> to vector<2x32xbf16>
    %cst_60 = arith.constant dense<0.000000e+00> : vector<2x96xf32>
    %220 = tpu.matmul %219, %77, %cst_60 {dimension_numbers = #tpu.dot_dimension_numbers<[1], [0], [0], [1], [0, 0, 1, 1], [], []>} : vector<2x32xbf16>, vector<32x96xbf16>, vector<2x96xf32> -> vector<2x96xf32>
    %221 = vector.extract_strided_slice %218 {offsets = [0, 0], sizes = [2, 32], strides = [1, 1]} : vector<2x96xf32> to vector<2x32xf32>
    %222 = vector.extract_strided_slice %220 {offsets = [0, 0], sizes = [2, 32], strides = [1, 1]} : vector<2x96xf32> to vector<2x32xf32>
    %223 = arith.addf %221, %222 : vector<2x32xf32>
    %224 = arith.negf %223 : vector<2x32xf32>
    %225 = math.exp %224 : vector<2x32xf32>
    %cst_61 = arith.constant 1.000000e+00 : f32
    %226 = vector.broadcast %cst_61 : f32 to vector<2x32xf32>
    %227 = arith.addf %226, %225 : vector<2x32xf32>
    %228 = arith.divf %226, %227 : vector<2x32xf32>
    %229 = vector.extract_strided_slice %218 {offsets = [0, 32], sizes = [2, 32], strides = [1, 1]} : vector<2x96xf32> to vector<2x32xf32>
    %230 = vector.extract_strided_slice %220 {offsets = [0, 32], sizes = [2, 32], strides = [1, 1]} : vector<2x96xf32> to vector<2x32xf32>
    %231 = arith.addf %229, %230 : vector<2x32xf32>
    %232 = arith.negf %231 : vector<2x32xf32>
    %233 = math.exp %232 : vector<2x32xf32>
    %cst_62 = arith.constant 1.000000e+00 : f32
    %234 = vector.broadcast %cst_62 : f32 to vector<2x32xf32>
    %235 = arith.addf %234, %233 : vector<2x32xf32>
    %236 = arith.divf %234, %235 : vector<2x32xf32>
    %237 = vector.extract_strided_slice %218 {offsets = [0, 64], sizes = [2, 32], strides = [1, 1]} : vector<2x96xf32> to vector<2x32xf32>
    %238 = vector.extract_strided_slice %220 {offsets = [0, 64], sizes = [2, 32], strides = [1, 1]} : vector<2x96xf32> to vector<2x32xf32>
    %239 = vector.broadcast %81 : vector<1x32xf32> to vector<2x32xf32>
    %240 = arith.addf %238, %239 : vector<2x32xf32>
    %241 = arith.mulf %228, %240 : vector<2x32xf32>
    %242 = arith.addf %237, %241 : vector<2x32xf32>
    %243 = math.tanh %242 : vector<2x32xf32>
    %cst_63 = arith.constant 1.000000e+00 : f32
    %244 = vector.broadcast %cst_63 : f32 to vector<2x32xf32>
    %245 = arith.subf %244, %236 : vector<2x32xf32>
    %246 = arith.mulf %245, %243 : vector<2x32xf32>
    %247 = arith.mulf %236, %182 : vector<2x32xf32>
    %248 = arith.addf %246, %247 : vector<2x32xf32>
    %249 = arith.truncf %248 : vector<2x32xf32> to vector<2x32xbf16>
    %cst_64 = arith.constant dense<0.000000e+00> : vector<2x96xf32>
    %250 = tpu.matmul %249, %79, %cst_64 {dimension_numbers = #tpu.dot_dimension_numbers<[1], [0], [0], [1], [0, 0, 1, 1], [], []>} : vector<2x32xbf16>, vector<32x96xbf16>, vector<2x96xf32> -> vector<2x96xf32>
    %251 = vector.broadcast %80 : vector<1x96xf32> to vector<2x96xf32>
    %252 = arith.addf %250, %251 : vector<2x96xf32>
    %253 = arith.truncf %216 : vector<2x32xf32> to vector<2x32xbf16>
    %cst_65 = arith.constant dense<0.000000e+00> : vector<2x96xf32>
    %254 = tpu.matmul %253, %78, %cst_65 {dimension_numbers = #tpu.dot_dimension_numbers<[1], [0], [0], [1], [0, 0, 1, 1], [], []>} : vector<2x32xbf16>, vector<32x96xbf16>, vector<2x96xf32> -> vector<2x96xf32>
    %255 = vector.extract_strided_slice %252 {offsets = [0, 0], sizes = [2, 32], strides = [1, 1]} : vector<2x96xf32> to vector<2x32xf32>
    %256 = vector.extract_strided_slice %254 {offsets = [0, 0], sizes = [2, 32], strides = [1, 1]} : vector<2x96xf32> to vector<2x32xf32>
    %257 = arith.addf %255, %256 : vector<2x32xf32>
    %258 = arith.negf %257 : vector<2x32xf32>
    %259 = math.exp %258 : vector<2x32xf32>
    %cst_66 = arith.constant 1.000000e+00 : f32
    %260 = vector.broadcast %cst_66 : f32 to vector<2x32xf32>
    %261 = arith.addf %260, %259 : vector<2x32xf32>
    %262 = arith.divf %260, %261 : vector<2x32xf32>
    %263 = vector.extract_strided_slice %252 {offsets = [0, 32], sizes = [2, 32], strides = [1, 1]} : vector<2x96xf32> to vector<2x32xf32>
    %264 = vector.extract_strided_slice %254 {offsets = [0, 32], sizes = [2, 32], strides = [1, 1]} : vector<2x96xf32> to vector<2x32xf32>
    %265 = arith.addf %263, %264 : vector<2x32xf32>
    %266 = arith.negf %265 : vector<2x32xf32>
    %267 = math.exp %266 : vector<2x32xf32>
    %cst_67 = arith.constant 1.000000e+00 : f32
    %268 = vector.broadcast %cst_67 : f32 to vector<2x32xf32>
    %269 = arith.addf %268, %267 : vector<2x32xf32>
    %270 = arith.divf %268, %269 : vector<2x32xf32>
    %271 = vector.extract_strided_slice %252 {offsets = [0, 64], sizes = [2, 32], strides = [1, 1]} : vector<2x96xf32> to vector<2x32xf32>
    %272 = vector.extract_strided_slice %254 {offsets = [0, 64], sizes = [2, 32], strides = [1, 1]} : vector<2x96xf32> to vector<2x32xf32>
    %273 = vector.broadcast %82 : vector<1x32xf32> to vector<2x32xf32>
    %274 = arith.addf %272, %273 : vector<2x32xf32>
    %275 = arith.mulf %262, %274 : vector<2x32xf32>
    %276 = arith.addf %271, %275 : vector<2x32xf32>
    %277 = math.tanh %276 : vector<2x32xf32>
    %cst_68 = arith.constant 1.000000e+00 : f32
    %278 = vector.broadcast %cst_68 : f32 to vector<2x32xf32>
    %279 = arith.subf %278, %270 : vector<2x32xf32>
    %280 = arith.mulf %279, %277 : vector<2x32xf32>
    %281 = arith.mulf %270, %216 : vector<2x32xf32>
    %282 = arith.addf %280, %281 : vector<2x32xf32>
    %283 = vector.extract_strided_slice %76 {offsets = [3, 0, 0], sizes = [1, 2, 96], strides = [1, 1, 1]} : vector<4x2x96xf32> to vector<1x2x96xf32>
    %284 = vector.shape_cast %283 : vector<1x2x96xf32> to vector<2x96xf32>
    %285 = arith.truncf %248 : vector<2x32xf32> to vector<2x32xbf16>
    %cst_69 = arith.constant dense<0.000000e+00> : vector<2x96xf32>
    %286 = tpu.matmul %285, %77, %cst_69 {dimension_numbers = #tpu.dot_dimension_numbers<[1], [0], [0], [1], [0, 0, 1, 1], [], []>} : vector<2x32xbf16>, vector<32x96xbf16>, vector<2x96xf32> -> vector<2x96xf32>
    %287 = vector.extract_strided_slice %284 {offsets = [0, 0], sizes = [2, 32], strides = [1, 1]} : vector<2x96xf32> to vector<2x32xf32>
    %288 = vector.extract_strided_slice %286 {offsets = [0, 0], sizes = [2, 32], strides = [1, 1]} : vector<2x96xf32> to vector<2x32xf32>
    %289 = arith.addf %287, %288 : vector<2x32xf32>
    %290 = arith.negf %289 : vector<2x32xf32>
    %291 = math.exp %290 : vector<2x32xf32>
    %cst_70 = arith.constant 1.000000e+00 : f32
    %292 = vector.broadcast %cst_70 : f32 to vector<2x32xf32>
    %293 = arith.addf %292, %291 : vector<2x32xf32>
    %294 = arith.divf %292, %293 : vector<2x32xf32>
    %295 = vector.extract_strided_slice %284 {offsets = [0, 32], sizes = [2, 32], strides = [1, 1]} : vector<2x96xf32> to vector<2x32xf32>
    %296 = vector.extract_strided_slice %286 {offsets = [0, 32], sizes = [2, 32], strides = [1, 1]} : vector<2x96xf32> to vector<2x32xf32>
    %297 = arith.addf %295, %296 : vector<2x32xf32>
    %298 = arith.negf %297 : vector<2x32xf32>
    %299 = math.exp %298 : vector<2x32xf32>
    %cst_71 = arith.constant 1.000000e+00 : f32
    %300 = vector.broadcast %cst_71 : f32 to vector<2x32xf32>
    %301 = arith.addf %300, %299 : vector<2x32xf32>
    %302 = arith.divf %300, %301 : vector<2x32xf32>
    %303 = vector.extract_strided_slice %284 {offsets = [0, 64], sizes = [2, 32], strides = [1, 1]} : vector<2x96xf32> to vector<2x32xf32>
    %304 = vector.extract_strided_slice %286 {offsets = [0, 64], sizes = [2, 32], strides = [1, 1]} : vector<2x96xf32> to vector<2x32xf32>
    %305 = vector.broadcast %81 : vector<1x32xf32> to vector<2x32xf32>
    %306 = arith.addf %304, %305 : vector<2x32xf32>
    %307 = arith.mulf %294, %306 : vector<2x32xf32>
    %308 = arith.addf %303, %307 : vector<2x32xf32>
    %309 = math.tanh %308 : vector<2x32xf32>
    %cst_72 = arith.constant 1.000000e+00 : f32
    %310 = vector.broadcast %cst_72 : f32 to vector<2x32xf32>
    %311 = arith.subf %310, %302 : vector<2x32xf32>
    %312 = arith.mulf %311, %309 : vector<2x32xf32>
    %313 = arith.mulf %302, %248 : vector<2x32xf32>
    %314 = arith.addf %312, %313 : vector<2x32xf32>
    %315 = arith.truncf %314 : vector<2x32xf32> to vector<2x32xbf16>
    %cst_73 = arith.constant dense<0.000000e+00> : vector<2x96xf32>
    %316 = tpu.matmul %315, %79, %cst_73 {dimension_numbers = #tpu.dot_dimension_numbers<[1], [0], [0], [1], [0, 0, 1, 1], [], []>} : vector<2x32xbf16>, vector<32x96xbf16>, vector<2x96xf32> -> vector<2x96xf32>
    %317 = vector.broadcast %80 : vector<1x96xf32> to vector<2x96xf32>
    %318 = arith.addf %316, %317 : vector<2x96xf32>
    %319 = arith.truncf %282 : vector<2x32xf32> to vector<2x32xbf16>
    %cst_74 = arith.constant dense<0.000000e+00> : vector<2x96xf32>
    %320 = tpu.matmul %319, %78, %cst_74 {dimension_numbers = #tpu.dot_dimension_numbers<[1], [0], [0], [1], [0, 0, 1, 1], [], []>} : vector<2x32xbf16>, vector<32x96xbf16>, vector<2x96xf32> -> vector<2x96xf32>
    %321 = vector.extract_strided_slice %318 {offsets = [0, 0], sizes = [2, 32], strides = [1, 1]} : vector<2x96xf32> to vector<2x32xf32>
    %322 = vector.extract_strided_slice %320 {offsets = [0, 0], sizes = [2, 32], strides = [1, 1]} : vector<2x96xf32> to vector<2x32xf32>
    %323 = arith.addf %321, %322 : vector<2x32xf32>
    %324 = arith.negf %323 : vector<2x32xf32>
    %325 = math.exp %324 : vector<2x32xf32>
    %cst_75 = arith.constant 1.000000e+00 : f32
    %326 = vector.broadcast %cst_75 : f32 to vector<2x32xf32>
    %327 = arith.addf %326, %325 : vector<2x32xf32>
    %328 = arith.divf %326, %327 : vector<2x32xf32>
    %329 = vector.extract_strided_slice %318 {offsets = [0, 32], sizes = [2, 32], strides = [1, 1]} : vector<2x96xf32> to vector<2x32xf32>
    %330 = vector.extract_strided_slice %320 {offsets = [0, 32], sizes = [2, 32], strides = [1, 1]} : vector<2x96xf32> to vector<2x32xf32>
    %331 = arith.addf %329, %330 : vector<2x32xf32>
    %332 = arith.negf %331 : vector<2x32xf32>
    %333 = math.exp %332 : vector<2x32xf32>
    %cst_76 = arith.constant 1.000000e+00 : f32
    %334 = vector.broadcast %cst_76 : f32 to vector<2x32xf32>
    %335 = arith.addf %334, %333 : vector<2x32xf32>
    %336 = arith.divf %334, %335 : vector<2x32xf32>
    %337 = vector.extract_strided_slice %318 {offsets = [0, 64], sizes = [2, 32], strides = [1, 1]} : vector<2x96xf32> to vector<2x32xf32>
    %338 = vector.extract_strided_slice %320 {offsets = [0, 64], sizes = [2, 32], strides = [1, 1]} : vector<2x96xf32> to vector<2x32xf32>
    %339 = vector.broadcast %82 : vector<1x32xf32> to vector<2x32xf32>
    %340 = arith.addf %338, %339 : vector<2x32xf32>
    %341 = arith.mulf %328, %340 : vector<2x32xf32>
    %342 = arith.addf %337, %341 : vector<2x32xf32>
    %343 = math.tanh %342 : vector<2x32xf32>
    %cst_77 = arith.constant 1.000000e+00 : f32
    %344 = vector.broadcast %cst_77 : f32 to vector<2x32xf32>
    %345 = arith.subf %344, %336 : vector<2x32xf32>
    %346 = arith.mulf %345, %343 : vector<2x32xf32>
    %347 = arith.mulf %336, %282 : vector<2x32xf32>
    %348 = arith.addf %346, %347 : vector<2x32xf32>
    %c0_78 = arith.constant 0 : index
    %c0_79 = arith.constant 0 : index
    %349 = vector.load %arg14[%c0_78, %c0_79] : memref<32x1xf32, #tpu.memory_space<vmem>>, vector<32x1xf32>
    %cst_80 = arith.constant dense<0.000000e+00> : vector<2x1xf32>
    %350 = tpu.matmul %348, %349, %cst_80 {dimension_numbers = #tpu.dot_dimension_numbers<[1], [0], [0], [1], [0, 0, 1, 1], [], []>} : vector<2x32xf32>, vector<32x1xf32>, vector<2x1xf32> -> vector<2x1xf32>
    %c0_81 = arith.constant 0 : index
    %351 = memref.load %arg15[%c0_81] : memref<1xf32, #tpu.memory_space<smem>>
    %352 = vector.broadcast %351 : f32 to vector<2x1xf32>
    %353 = arith.addf %350, %352 : vector<2x1xf32>
    %c0_82 = arith.constant 0 : index
    %c0_83 = arith.constant 0 : index
    %354 = vector.load %arg16[%c0_82, %c0_83] : memref<2x1xf32, #tpu.memory_space<vmem>>, vector<2x1xf32>
    tpu.vector_store %arg16[%c0_82, %c0_83], %353 {strides = array<i32>} : memref<2x1xf32, #tpu.memory_space<vmem>>, vector<2x1xf32>,
    return
  }
  func.func @transform_0(%arg0: i32) -> (i32, i32, i32) {
    %c0_i32 = arith.constant 0 : i32
    %c0_i32_0 = arith.constant 0 : i32
    %c0_i32_1 = arith.constant 0 : i32
    %c0_i32_2 = arith.constant 0 : i32
    return %c0_i32, %c0_i32_0, %c0_i32_1 : i32, i32, i32
  }
  func.func @transform_1(%arg0: i32) -> (i32, i32, i32) {
    %c0_i32 = arith.constant 0 : i32
    %c0_i32_0 = arith.constant 0 : i32
    %c0_i32_1 = arith.constant 0 : i32
    %c0_i32_2 = arith.constant 0 : i32
    return %c0_i32, %c0_i32_0, %c0_i32_1 : i32, i32, i32
  }
  func.func @transform_2(%arg0: i32) -> (i32, i32) {
    %c0_i32 = arith.constant 0 : i32
    %c0_i32_0 = arith.constant 0 : i32
    %c0_i32_1 = arith.constant 0 : i32
    return %c0_i32, %c0_i32_0 : i32, i32
  }
  func.func @transform_3(%arg0: i32) -> (i32, i32, i32) {
    %c0_i32 = arith.constant 0 : i32
    %c0_i32_0 = arith.constant 0 : i32
    %c0_i32_1 = arith.constant 0 : i32
    %c0_i32_2 = arith.constant 0 : i32
    return %c0_i32, %c0_i32_0, %c0_i32_1 : i32, i32, i32
  }
  func.func @transform_4(%arg0: i32) -> (i32, i32) {
    %c0_i32 = arith.constant 0 : i32
    %c0_i32_0 = arith.constant 0 : i32
    %c0_i32_1 = arith.constant 0 : i32
    return %c0_i32, %c0_i32_0 : i32, i32
  }
  func.func @transform_5(%arg0: i32) -> (i32, i32) {
    %c0_i32 = arith.constant 0 : i32
    %c0_i32_0 = arith.constant 0 : i32
    %c0_i32_1 = arith.constant 0 : i32
    return %c0_i32, %c0_i32_0 : i32, i32
  }
  func.func @transform_6(%arg0: i32) -> (i32, i32) {
    %c0_i32 = arith.constant 0 : i32
    %c0_i32_0 = arith.constant 0 : i32
    %c0_i32_1 = arith.constant 0 : i32
    return %c0_i32, %c0_i32_0 : i32, i32
  }
  func.func @transform_7(%arg0: i32) -> (i32, i32) {
    %c0_i32 = arith.constant 0 : i32
    %c0_i32_0 = arith.constant 0 : i32
    %c0_i32_1 = arith.constant 0 : i32
    return %c0_i32, %c0_i32_0 : i32, i32
  }
  func.func @transform_8(%arg0: i32) -> (i32, i32) {
    %c0_i32 = arith.constant 0 : i32
    %c0_i32_0 = arith.constant 0 : i32
    %c0_i32_1 = arith.constant 0 : i32
    return %c0_i32, %c0_i32_0 : i32, i32
  }
  func.func @transform_9(%arg0: i32) -> (i32, i32) {
    %c0_i32 = arith.constant 0 : i32
    %c0_i32_0 = arith.constant 0 : i32
    %c0_i32_1 = arith.constant 0 : i32
    return %c0_i32, %c0_i32_0 : i32, i32
  }
  func.func @transform_10(%arg0: i32) -> (i32, i32) {
    %c0_i32 = arith.constant 0 : i32
    %c0_i32_0 = arith.constant 0 : i32
    %c0_i32_1 = arith.constant 0 : i32
    return %c0_i32, %c0_i32_0 : i32, i32
  }
  func.func @transform_11(%arg0: i32) -> (i32, i32) {
    %c0_i32 = arith.constant 0 : i32
    %c0_i32_0 = arith.constant 0 : i32
    %c0_i32_1 = arith.constant 0 : i32
    return %c0_i32, %c0_i32_0 : i32, i32
  }
  func.func @transform_12(%arg0: i32) -> (i32, i32) {
    %c0_i32 = arith.constant 0 : i32
    %c0_i32_0 = arith.constant 0 : i32
    %c0_i32_1 = arith.constant 0 : i32
    return %c0_i32, %c0_i32_0 : i32, i32
  }
  func.func @transform_13(%arg0: i32) -> (i32, i32) {
    %c0_i32 = arith.constant 0 : i32
    %c0_i32_0 = arith.constant 0 : i32
    %c0_i32_1 = arith.constant 0 : i32
    return %c0_i32, %c0_i32_0 : i32, i32
  }
  func.func @transform_14(%arg0: i32) -> i32 {
    %c0_i32 = arith.constant 0 : i32
    %c0_i32_0 = arith.constant 0 : i32
    return %c0_i32 : i32
  }
  func.func @transform_15(%arg0: i32) -> (i32, i32) {
    %c0_i32 = arith.constant 0 : i32
    %c0_i32_0 = arith.constant 0 : i32
    %c0_i32_1 = arith.constant 0 : i32
    return %c0_i32, %c0_i32_0 : i32, i32
  }
}

</mosaic_0001>

<bundles_post_ra>
// kernel: tpu_custom_call.1
= control target key start
LH: loop header
LB: loop body
LE: loop exit
PB: predicated region body
PF: predicated region fallthrough
CT: control target
= control target key end

     0   :  { %21 = vsyncpa [#allocation4], 0  ;;  %s2525_s0 = inlined_call_operand.vmem [shape: f32[16,2,4], index: 0, kind: input, shape index: {}]   ;;  %s2526_s1 = inlined_call_operand.hbm [shape: bf16[3,4,16], index: 1, kind: input, shape index: {}]   ;;  %s2527_s2 = inlined_call_operand.hbm [shape: f32[1,16], index: 2, kind: input, shape index: {}]   ;;  %s2528_s3 = inlined_call_operand.vmem [shape: bf16[3,16,32], index: 3, kind: input, shape index: {}]   ;;  %s2529_s4 = inlined_call_operand.vmem [shape: f32[1,32], index: 4, kind: input, shape index: {}]   ;;  %s2530_s5 = inlined_call_operand.vmem [shape: bf16[32,96], index: 5, kind: input, shape index: {}]   ;;  %s2531_s6 = inlined_call_operand.vmem [shape: bf16[32,96], index: 6, kind: input, shape index: {}]   ;;  %s2532_s7 = inlined_call_operand.vmem [shape: f32[1,96], index: 7, kind: input, shape index: {}]   ;;  %s2533_s8 = inlined_call_operand.vmem [shape: f32[1,32], index: 8, kind: input, shape index: {}]   ;;  %s2534_s9 = inlined_call_operand.vmem [shape: bf16[32,96], index: 9, kind: input, shape index: {}]   ;;  %s2535_s10 = inlined_call_operand.vmem [shape: bf16[32,96], index: 10, kind: input, shape index: {}]   ;;  %s2536_s11 = inlined_call_operand.vmem [shape: f32[1,96], index: 11, kind: input, shape index: {}]   ;;  %s2537_s12 = inlined_call_operand.vmem [shape: f32[1,32], index: 12, kind: input, shape index: {}]   ;;  %s2538_s13 = inlined_call_operand.vmem [shape: f32[32,1], index: 13, kind: input, shape index: {}]   ;;  %s2539_s14 = inlined_call_operand.<no memory space> [shape: f32[1], index: 14, kind: input, shape index: {}]   ;;  %s2540_s15 = inlined_call_operand.vmem [shape: f32[2,1], index: 15, kind: output, shape index: {}]  }
   0x1   :  { %22 = vsyncpa [#allocation6], 0  ;;  %s2058_s18 = smov [#allocation3]   ;;  %s2010_s22 = scalar_lea.hbm %s2526_s1, 96 }
   0x2   :  { %s30_s19 = sshll.u32 %s2058_s18, 4  ;;  %p2011_p0 = scmp.ne.s32.totalorder %s2526_s1, %s2010_s22  ;;  %s31_s19 = int_to_ptr.vmem [resolvable:$true] %s30_s19 }
   0x3   :  { %p2014_p1 = scmp.lt.u32.totalorder %s2010_s22, %s2526_s1 }
   0x5   :  { %p2016_p2 = pnand %p2014_p1, %p2011_p0 }
   0x7   :  { %2019 = shalt.err (!%p2016_p2)
}
   0x8   :  { %s2020_s27 = scalar_lea.vmem %s31_s19, 96  ;;  %p2025_p4 = scmp.lt.s32.totalorder %s31_s19, %s31_s19 }
   0x9   :  { %p2021_p3 = scmp.ne.s32.totalorder %s31_s19, %s2020_s27  ;;  %p2026_p5 = scmp.lt.s32.totalorder %s2020_s27, %s2020_s27 }
   0xb   :  { %p2027_p6 = por %p2026_p5, %p2025_p4 }
   0xd   :  { %p2028_p7 = pnand %p2027_p6, %p2021_p3 }
   0xf   :  { %2031 = shalt.err (!%p2028_p7)
}
  0x10   :  { %s2059_s28 = smov 32   ;;  %s2060_s29 = smov 2  }
  0x11   :  { %36 = dma.hbm_to_vmem [thread:$0]  %s2526_s1, 96, %s31_s19, [#allocation4], %s2059_s28, %s2059_s28, %s2060_s29  }
  0x12   :  { %s2061_s17 = smov [#allocation5]   ;;  %s2032_s22 = scalar_lea.hbm %s2527_s2, 16 }
  0x13   :  { %s43_s18 = sshll.u32 %s2061_s17, 4  ;;  %p2033_p8 = scmp.ne.s32.totalorder %s2527_s2, %s2032_s22  ;;  %s44_s18 = int_to_ptr.vmem [resolvable:$true] %s43_s18 }
  0x14   :  { %p2036_p9 = scmp.lt.u32.totalorder %s2032_s22, %s2527_s2 }
  0x16   :  { %p2038_p10 = pnand %p2036_p9, %p2033_p8 }
  0x18   :  { %2041 = shalt.err (!%p2038_p10)
}
  0x19   :  { %s2042_s27 = scalar_lea.vmem %s44_s18, 16  ;;  %s2046_s1 = scalar_lea.vmem %s44_s18, 32 }
  0x1a   :  { %p2043_p11 = scmp.ne.s32.totalorder %s44_s18, %s2042_s27  ;;  %p2047_p12 = scmp.lt.s32.totalorder %s44_s18, %s44_s18 }
  0x1b   :  { %p2048_p13 = scmp.lt.s32.totalorder %s2046_s1, %s2042_s27 }
  0x1d   :  { %p2049_p0 = por %p2048_p13, %p2047_p12 }
  0x1f   :  { %p2050_p1 = pnand %p2049_p0, %p2043_p11 }
  0x21   :  { %2053 = shalt.err (!%p2050_p1)
}
  0x22   :  { %46 = dma.hbm_to_vmem [thread:$0]  %s2527_s2, 16, %s44_s18, [#allocation6]  }
  0x23   :  { %2054 = dma.done.wait [#allocation4], 96  }
  0x24   :  { %2055 = vsyncadd [#allocation4], 4294967200 }
  0x25   :  { %2056 = dma.done.wait [#allocation6], 16  }
  0x26   :  { %2057 = vsyncadd [#allocation6], 4294967280  ;;  %v111_v0 = vlaneseq  ;;  %v2062_v1 = vmov 0.0   ;;  %vm2063_vm0 = vmmov 0   ;;  %v2064_v2 = vmov 1983009808  }
  0x27   :  { %1768 = vmatprep.subr.bf16.mxu0 %v2062_v1  ;;  %1774 = vmatprep.subr.bf16.mxu1 %v2062_v1  ;;  %v109_v3 = vunpack.c.l.s4 %v2064_v2  ;;  %vm192_vm1 = vcmask 1041408   ;;  %v95_v6 = vld [vmem:[#allocation3 + $0x2] sm:$0x3]  ;;  %v94_v7 = vld [vmem:[#allocation3] sm:$0x3]  ;;  %vm188_vm2 = vcmask 31744  }
  0x28   :  { %1770 = vmatprep.mubr.msk.bf16.mxu0 %vm2063_vm0, %v2062_v1  ;;  %1776 = vmatprep.mubr.msk.bf16.mxu1 %vm2063_vm0, %v2062_v1  ;;  %v112_v5 = vshrl.u32 %v111_v0, 7  ;;  %v194_v8 = vsel %vm192_vm1, %v95_v6, 0  ;;  %v241_v9 = vsel %vm192_vm1, %v94_v7, 0  ;;  %v79_v15 = vld [vmem:[%s2525_s0 + $0x2] sm:$0x3]  ;;  %v1947_v50 = vld [vmem:[%s2528_s3 + $0x8] sm:$0xff]  }
  0x29   :  { %v110_v4 = vunpack.c.0.s8 %v109_v3  ;;  %1769 = vmatpush3.bf16.msra.mxu0 %v194_v8  ;;  %1775 = vmatpush3.bf16.msra.mxu1 %v241_v9  ;;  %v2006_v11 = vld.sshfl [vmem:[%s2525_s0] sm:$0xf pattern:$0x76325410]  ;;  %v81_v16 = vld [vmem:[%s2525_s0 + $0x6] sm:$0x3]  ;;  %v106_v21 = vcombine.low %v2062_v1, %v79_v15 }
  0x2a   :  { %1780 = vmatprep.subr.bf16.mxu0 %v2062_v1  ;;  %1786 = vmatprep.subr.bf16.mxu1 %v2062_v1  ;;  %v2007_v12 = vld.sshfl [vmem:[%s2525_s0 + $0x8] sm:$0xf pattern:$0x76325410]  ;;  %v83_v17 = vld [vmem:[%s2525_s0 + $0xa] sm:$0x3]  ;;  %v285_v26 = vcombine.low %v79_v15, %v81_v16 }
  0x2b   :  { %v2181_v10 = vsub.s32 %v110_v4, %v112_v5  ;;  %v2008_v13 = vld.sshfl [vmem:[%s2525_s0 + $0x10] sm:$0xf pattern:$0x76325410]  ;;  %v85_v18 = vld [vmem:[%s2525_s0 + $0xe] sm:$0x3]  ;;  %v107_v24 = vcombine.low %v81_v16, %v83_v17  ;;  %v167_v29 = vcombine.low %v2006_v11, %v2007_v12 }
  0x2c   :  { %v2009_v14 = vld.sshfl [vmem:[%s2525_s0 + $0x18] sm:$0xf pattern:$0x76325410]  ;;  %v87_v19 = vld [vmem:[%s2525_s0 + $0x12] sm:$0x3]  ;;  %v286_v27 = vcombine.low %v83_v17, %v85_v18 }
  0x2d   :  { %v89_v20 = vld [vmem:[%s2525_s0 + $0x16] sm:$0x3]  ;;  %v91_v22 = vld [vmem:[%s2525_s0 + $0x1a] sm:$0x3]  ;;  %v93_v23 = vld [vmem:[%s2525_s0 + $0x1e] sm:$0x3]  ;;  %v123_v25 = vcombine.low %v85_v18, %v87_v19  ;;  %v184_v30 = vcombine.low %v2008_v13, %v2009_v14  ;;  %v114_v31 = vrot.slane %v106_v21, %v2181_v10  ;;  %v121_v33 = vrot.slane %v107_v24, %v2181_v10 }
  0x2e   :  { %v96_v28 = vld [vmem:[#allocation3 + $0x4] sm:$0x3]  ;;  %v124_v32 = vcombine.low %v89_v20, %v91_v22  ;;  %v302_v35 = vcombine.low %v87_v19, %v89_v20  ;;  %v303_v36 = vcombine.low %v91_v22, %v93_v23  ;;  %v293_v40 = vrot.slane %v285_v26, %v2181_v10  ;;  %v1669_v62 = vld [vmem:[#allocation5] ss:$0 sm:$0xff]  ;;  %s2066_s16 = smov 64   ;;  %s2067_s25 = smov 96  }
  0x2f   :  { %v131_v34 = vrot.slane %v123_v25, %v2181_v10  ;;  %v187_v37 = vpack.c.bf16 %v184_v30, %v167_v29  ;;  %v326_v39 = vsel %vm192_vm1, %v96_v28, 0  ;;  %v122_v41 = vcombine.low %v114_v31, %v121_v33  ;;  %v1948_v51 = vld [vmem:[%s2528_s3] sm:$0xff]   ;;  %v1949_v33 = vld [vmem:[%s2528_s3 + $0x10] sm:$0xff]  }
  0x30   :  { %v138_v38 = vrot.slane %v124_v32, %v2181_v10  ;;  %v300_v42 = vrot.slane %v286_v27, %v2181_v10  ;;  %v310_v43 = vrot.slane %v302_v35, %v2181_v10  ;;  %v317_v44 = vrot.slane %v303_v36, %v2181_v10  ;;  %v2271_v36 = vld [vmem:[%s2531_s6] sm:$0xff]  }
  0x31   :  { %1771 = vmatmul.mubr.msk.bf16.vlgmr.msra.gmra.mrb[0].mxu0 %vm188_vm2, %v187_v37  ;;  %vm468_vm3 = vcmask 130048   ;;  %vm662_vm4 = vcmask 261120   ;;  %vm1658_vm5 = vcmask 1024  }
  0x32   :  { %v139_v45 = vcombine.low %v131_v34, %v138_v38  ;;  %1781 = vmatpush3.bf16.msra.mxu0 %v326_v39  ;;  %1782 = vmatprep.mubr.msk.bf16.mxu0 %vm2063_vm0, %v2062_v1  ;;  %v301_v46 = vcombine.low %v293_v40, %v300_v42  ;;  %v318_v47 = vcombine.low %v310_v43, %v317_v44  ;;  %v2277_v38 = vld [vmem:[%s2531_s6 + $0x8] sm:$0xff]   ;;  %v2065_v39 = vmov 0   ;;  %v1952_v40 = vld [vmem:[%s2530_s5] sm:$0xff]  }
  0x33   :  { %1792 = vmatprep.subr.bf16.mxu0 %v2062_v1  ;;  %v1687_v42 = vld [vmem:[%s2533_s8] ss:$0 sm:$0xff] }
  0x34   :  { %v142_v48 = vpack.c.bf16 %v139_v45, %v122_v41  ;;  %v321_v49 = vpack.c.bf16 %v318_v47, %v301_v46  ;;  %v1953_v41 = vld [vmem:[%s2530_s5 + $0x8] sm:$0xff]   ;;  %810 = vrot.lane.b32.xlu0 %v1687_v42, %s2066_s16 }
  0x36   :  { %1777 = vmatmul.mubr.msk.bf16.vlgmr.msra.gmra.mrb[0].mxu1 %vm188_vm2, %v142_v48 }
  0x37   :  { %1788 = vmatprep.mubr.msk.bf16.mxu1 %vm2063_vm0, %v2062_v1  ;;  %1787 = vmatpush3.bf16.msra.mxu1 %v1947_v50 }
  0x38   :  { %1798 = vmatprep.subr.bf16.mxu1 %v2062_v1 }
  0x39   :  { %1783 = vmatmul.mubr.msk.bf16.vlgmr.msra.gmra.mrb[4].mxu0 %vm188_vm2, %v321_v49 }
  0x3a   :  { %1794 = vmatprep.mubr.msk.bf16.mxu0 %vm2063_vm0, %v2062_v1  ;;  %1793 = vmatpush3.bf16.msra.mxu0 %v1948_v51 }
  0x3b   :  { %1804 = vmatprep.subr.bf16.mxu0 %v2062_v1 }
 0x104   :  { %v230_v52 = vpop.f32.mrb[0].mxu0 }
 0x105   :  { %v1772_v53 = vpop.f32.mrb[1].mxu0 }
 0x106   :  { %v233_v54 = vpop.f32.mrb[2].mxu0 }
 0x107   :  { %v1773_v55 = vpop.f32.mrb[3].mxu0 }
 0x109   :  { %v277_v56 = vpop.f32.mrb[0].mxu1 }
 0x10a   :  { %v278_v57 = vadd.f32 %v277_v56, %v230_v52  ;;  %v1778_v58 = vpop.f32.mrb[1].mxu1  ;;  %v1679_v52 = vld [vmem:[%s2529_s4] ss:$0 sm:$0xff] }
 0x10b   :  { %v280_v59 = vpop.f32.mrb[2].mxu1 }
 0x10c   :  { %v281_v60 = vadd.f32 %v280_v59, %v233_v54  ;;  %v1779_v61 = vpop.f32.mrb[3].mxu1  ;;  %v362_v63 = vpop.f32.mrb[4].mxu0 }
 0x10d   :  { %v369_v0 = vadd.f32 %v362_v63, %v278_v57  ;;  %v1784_v2 = vpop.f32.mrb[5].mxu0 }
 0x10e   :  { %v365_v3 = vpop.f32.mrb[6].mxu0 }
 0x10f   :  { %v377_v4 = vadd.f32 %v1669_v62, %v369_v0  ;;  %v370_v5 = vadd.f32 %v365_v3, %v281_v60  ;;  %v1785_v6 = vpop.f32.mrb[7].mxu0  ;;  %v2302_v60 = vpop.permute.xlu0 %810 }
 0x111   :  { %v379_v7 = vmax.f32 %v377_v4, 0.0  ;;  %v378_v8 = vadd.f32 %v1669_v62, %v370_v5  ;;  %v1680_v5 = vld [vmem:[%s2532_s7] ss:$0 sm:$0xff] }
 0x113   :  { %v383_v9 = vcombine.high %v379_v7, %v379_v7  ;;  %v390_v11 = vrot.slane %v379_v7, %v2181_v10  ;;  %v380_v12 = vmax.f32 %v378_v8, 0.0 }
 0x115   :  { %v397_v13 = vrot.slane %v383_v9, %v2181_v10  ;;  %v398_v14 = vcombine.high %v390_v11, %v390_v11  ;;  %v400_v15 = vcombine.high %v380_v12, %v380_v12  ;;  %v407_v16 = vrot.slane %v380_v12, %v2181_v10 }
 0x117   :  { %v424_v17 = vcombine.low %v2062_v1, %v398_v14  ;;  %v443_v18 = vcombine.low %v390_v11, %v397_v13  ;;  %v414_v19 = vrot.slane %v400_v15, %v2181_v10  ;;  %v1675_v20 = vcombine.high %v390_v11, %v397_v13 }
 0x118   :  { %v1670_v21 = vcombine.high %v397_v13, %v407_v16 }
 0x119   :  { %v432_v22 = vrot.slane %v424_v17, %v2181_v10  ;;  %v444_v23 = vcombine.low %v407_v16, %v414_v19  ;;  %v1676_v25 = vcombine.high %v407_v16, %v414_v19  ;;  %v451_v26 = vrot.slane %v443_v18, %v2181_v10 }
 0x11a   :  { %v439_v24 = vrot.slane %v1670_v21, %v2181_v10  ;;  %v569_v28 = vrot.slane %v1675_v20, %v2181_v10 }
 0x11b   :  { %v458_v27 = vrot.slane %v444_v23, %v2181_v10  ;;  %v576_v29 = vrot.slane %v1676_v25, %v2181_v10  ;;  %v2330_v23 = vld [vmem:[%s2534_s9] sm:$0xff]   ;;  %v2342_v25 = vld [vmem:[%s2534_s9 + $0x8] sm:$0xff]  }
 0x11c   :  { %v440_v30 = vcombine.low %v432_v22, %v439_v24  ;;  %v2325_v22 = vld [vmem:[%s2535_s10] sm:$0xff]   ;;  %v2336_v24 = vld [vmem:[%s2535_s10 + $0x8] sm:$0xff]  }
 0x11d   :  { %v459_v31 = vcombine.low %v451_v26, %v458_v27  ;;  %v577_v34 = vcombine.low %v569_v28, %v576_v29 }
 0x11e   :  { %v442_v32 = vpack.c.bf16 %v440_v30, %v440_v30 }
 0x11f   :  { %v461_v35 = vpack.c.bf16 %v459_v31, %v459_v31  ;;  %v579_v37 = vpack.c.bf16 %v577_v34, %v577_v34  ;;  %v1695_v31 = vld [vmem:[%s2537_s12] ss:$0 sm:$0xff] }
 0x120   :  { %1795 = vmatmul.mubr.msk.bf16.vlgmr.msra.gmra.mrb[8].mxu0 %vm468_vm3, %v442_v32 }
 0x121   :  { %1789 = vmatmul.mubr.msk.bf16.vlgmr.msra.gmra.mrb[4].mxu1 %vm468_vm3, %v461_v35  ;;  %1808 = vmatprep.mubr.msk.bf16.mxu0 %vm2063_vm0, %v2062_v1 }
 0x122   :  { %1799 = vmatpush3.bf16.msra.mxu1 %v1949_v33  ;;  %1800 = vmatprep.mubr.msk.bf16.mxu1 %vm2063_vm0, %v2062_v1 }
 0x123   :  { %1812 = vmatprep.subr.bf16.mxu1 %v2062_v1  ;;  %1805 = vmatpush3.bf16.msra.mxu0 %v1952_v40 }
 0x124   :  { %1806 = vmatprep.subr.bf16.mxu0 %v2062_v1 }
 0x127   :  { %1807 = vmatpush3.bf16.msra.mxu0 %v1953_v41 }
 0x128   :  { %1820 = vmatprep.subr.bf16.mxu0 %v2062_v1 }
 0x129   :  { %1801 = vmatmul.mubr.msk.bf16.vlgmr.msra.gmra.mrb[8].mxu1 %vm468_vm3, %v579_v37 }
 0x12a   :  { %1813 = vmatpush3.bf16.msra.mxu1 %v2271_v36  ;;  %1816 = vmatprep.mubr.msk.bf16.mxu1 %vm2063_vm0, %v2062_v1 }
 0x12b   :  { %1814 = vmatprep.subr.bf16.mxu1 %v2062_v1 }
 0x12e   :  { %1815 = vmatpush3.bf16.msra.mxu1 %v2277_v38 }
 0x12f   :  { %1828 = vmatprep.subr.bf16.mxu1 %v2062_v1 }
 0x131   :  { %1817 = vmatmul.mubr.bf16.vlgmr.msra.gmra.mrb[12].mxu1 %v2065_v39 }
 0x132   :  { %1832 = vmatprep.mubr.msk.bf16.mxu1 %vm2063_vm0, %v2062_v1  ;;  %1829 = vmatpush3.bf16.msra.mxu1 %v2325_v22 }
 0x133   :  { %1830 = vmatprep.subr.bf16.mxu1 %v2062_v1 }
 0x136   :  { %1831 = vmatpush3.bf16.msra.mxu1 %v2336_v24 }
 0x137   :  { %1844 = vmatprep.subr.bf16.mxu1 %v2062_v1 }
 0x139   :  { %1833 = vmatmul.mubr.bf16.vlgmr.msra.gmra.mrb[16].mxu1 %v2065_v39 }
 0x13a   :  { %1845 = vmatpush3.bf16.msra.mxu1 %v2330_v23  ;;  %1848 = vmatprep.mubr.msk.bf16.mxu1 %vm2063_vm0, %v2062_v1 }
 0x13b   :  { %1846 = vmatprep.subr.bf16.mxu1 %v2062_v1 }
 0x13e   :  { %1847 = vmatpush3.bf16.msra.mxu1 %v2342_v25 }
 0x13f   :  { %1860 = vmatprep.subr.bf16.mxu1 %v2062_v1 }
 0x1f3   :  { %v555_v43 = vpop.f32.mrb[8].mxu0 }
 0x1f4   :  { %v1796_v44 = vpop.f32.mrb[9].mxu0  ;;  %v506_v45 = vpop.f32.mrb[4].mxu1 }
 0x1f5   :  { %v556_v46 = vadd.f32 %v555_v43, %v506_v45  ;;  %v558_v47 = vpop.f32.mrb[10].mxu0  ;;  %v1790_v48 = vpop.f32.mrb[5].mxu1  ;;  %v2388_v43 = vld [vmem:[%s2536_s11] ss:$0 sm:$0xff] }
 0x1f6   :  { %v1797_v49 = vpop.f32.mrb[11].mxu0  ;;  %v509_v50 = vpop.f32.mrb[6].mxu1 }
 0x1f7   :  { %v1791_v51 = vpop.f32.mrb[7].mxu1 }
 0x1fc   :  { %v623_v53 = vpop.f32.mrb[8].mxu1 }
 0x1fd   :  { %v629_v54 = vadd.f32 %v623_v53, %v556_v46  ;;  %v1802_v55 = vpop.f32.mrb[9].mxu1 }
 0x1fe   :  { %v626_v56 = vpop.f32.mrb[10].mxu1 }
 0x1ff   :  { %v636_v57 = vadd.f32 %v1679_v52, %v629_v54  ;;  %v1803_v58 = vpop.f32.mrb[11].mxu1 }
 0x201   :  { %v637_v59 = vmax.f32 %v636_v57, 0.0 }
 0x203   :  { %v638_v61 = vpack.c.bf16 %v637_v59, %v637_v59 }
 0x204   :  { %v792_v62 = vpop.f32.mrb[12].mxu1 }
 0x205   :  { %1809 = vmatmul.mubr.msk.bf16.vlgmr.msra.gmra.mrb[12].mxu0 %vm662_vm4, %v638_v61  ;;  %v1818_v63 = vpop.f32.mrb[13].mxu1  ;;  %v813_v0 = vadd.f32 %v2302_v60, %v792_v62 }
 0x206   :  { %v795_v2 = vpop.f32.mrb[14].mxu1  ;;  %1824 = vmatprep.mubr.msk.bf16.mxu0 %vm2063_vm0, %v2062_v1  ;;  %1821 = vmatpush3.bf16.msra.mxu0 %v2330_v23 }
 0x207   :  { %v1819_v3 = vpop.f32.mrb[15].mxu1  ;;  %v821_v4 = vrot.slane %v813_v0, %v2181_v10  ;;  %1822 = vmatprep.subr.bf16.mxu0 %v2062_v1 }
 0x209   :  { %822 = vrot.lane.b32.xlu0 %v821_v4, %s2066_s16 }
 0x20a   :  { %1823 = vmatpush3.bf16.msra.mxu0 %v2342_v25 }
 0x20b   :  { %1836 = vmatprep.subr.bf16.mxu0 %v2062_v1 }
 0x20c   :  { %v951_v34 = vpop.f32.mrb[16].mxu1 }
 0x20d   :  { %v1834_v35 = vpop.f32.mrb[17].mxu1 }
 0x20e   :  { %v954_v37 = vpop.f32.mrb[18].mxu1 }
 0x20f   :  { %v1835_v39 = vpop.f32.mrb[19].mxu1 }
 0x27b   :  { %v823_v17 = vpop.permute.xlu0 %822 }
 0x2d8   :  { %v700_v6 = vpop.f32.mrb[12].mxu0 }
 0x2d9   :  { %v2313_v7 = vadd.f32 %v1680_v5, %v700_v6  ;;  %v1810_v8 = vpop.f32.mrb[13].mxu0 }
 0x2da   :  { %v703_v9 = vpop.f32.mrb[14].mxu0 }
 0x2db   :  { %v2317_v11 = vrot.slane %v2313_v7, %v2181_v10  ;;  %v1811_v12 = vpop.f32.mrb[15].mxu0 }
 0x2dd   :  { %v798_v13 = vadd.f32 %v792_v62, %v2317_v11  ;;  %v722_v63 = vcombine.high %v2317_v11, %v2317_v11 }
 0x2df   :  { %v1686_v14 = vmul.f32 -1.442695, %v798_v13 }
 0x2e1   :  { %1958 = vpow2.f32 %v1686_v14 }
 0x2eb   :  { %v1959_v15 = vpop.eup %1958 }
 0x2ec   :  { %v802_v16 = vadd.f32 1.0, %v1959_v15 }
 0x2ee   :  { %1960 = vrcp.f32 %v802_v16 }
 0x2f8   :  { %v1961_v18 = vpop.eup %1960 }
 0x2f9   :  { %v825_v19 = vmul.f32 %v1961_v18, %v823_v17  ;;  %v832_v27 = vsub.f32 1.0, %v1961_v18  ;;  %v838_v29 = vmul.f32 0.0, %v1961_v18 }
 0x2fb   :  { %827 = vrot.lane.b32.xlu1 %v825_v19, %s2066_s16 }
 0x36d   :  { %v828_v20 = vpop.permute.xlu1 %827 }
 0x36e   :  { %v830_v21 = vadd.f32 %v828_v20, %v2317_v11 }
 0x370   :  { %1962 = vtanh.f32 %v830_v21 }
 0x37a   :  { %v1963_v26 = vpop.eup %1962 }
 0x37b   :  { %834 = vrot.lane.b32.xlu1 %v1963_v26, %s2067_s25 }
 0x37f   :  { %969 = vrot.lane.b32.xlu1 %v1695_v31, %s2066_s16 }
 0x3ed   :  { %v835_v28 = vpop.permute.xlu1 %834 }
 0x3ee   :  { %v837_v30 = vmul.f32 %v835_v28, %v832_v27 }
 0x3f0   :  { %v2361_v32 = vadd.f32 %v838_v29, %v837_v30 }
 0x3f1   :  { %v2367_v40 = vpop.permute.xlu1 %969 }
 0x3f2   :  { %v840_v33 = vpack.c.bf16 %v2361_v32, %v2361_v32  ;;  %v972_v41 = vadd.f32 %v2367_v40, %v951_v34 }
 0x3f4   :  { %848 = vrot.lane.b32.xlu0 %v840_v33, %s2067_s25 }
 0x3f8   :  { %974 = vrot.lane.b32.xlu0 %v972_v41, %s2066_s16 }
 0x466   :  { %v849_v42 = vpop.permute.xlu0 %848 }
 0x467   :  { %1825 = vmatmul.mubr.msk.bf16.vlgmr.msra.gmra.mrb[16].mxu0 %vm662_vm4, %v849_v42 }
 0x468   :  { %1837 = vmatpush3.bf16.msra.mxu0 %v2271_v36  ;;  %1840 = vmatprep.mubr.msk.bf16.mxu0 %vm2063_vm0, %v2062_v1 }
 0x469   :  { %1838 = vmatprep.subr.bf16.mxu0 %v2062_v1 }
 0x46a   :  { %v975_v59 = vpop.permute.xlu0 %974 }
 0x46c   :  { %1839 = vmatpush3.bf16.msra.mxu0 %v2277_v38 }
 0x46d   :  { %1852 = vmatprep.subr.bf16.mxu0 %v2062_v1 }
 0x46f   :  { %1841 = vmatmul.mubr.msk.bf16.vlgmr.msra.gmra.mrb[20].mxu0 %vm662_vm4, %v849_v42 }
 0x470   :  { %1853 = vmatpush3.bf16.msra.mxu0 %v2325_v22  ;;  %1856 = vmatprep.mubr.msk.bf16.mxu0 %vm2063_vm0, %v2062_v1 }
 0x471   :  { %1854 = vmatprep.subr.bf16.mxu0 %v2062_v1 }
 0x474   :  { %1855 = vmatpush3.bf16.msra.mxu0 %v2336_v24 }
 0x475   :  { %1868 = vmatprep.subr.bf16.mxu0 %v2062_v1 }
 0x53a   :  { %v899_v44 = vpop.f32.mrb[16].mxu0 }
 0x53b   :  { %v900_v45 = vadd.f32 %v2388_v43, %v899_v44  ;;  %v1826_v46 = vpop.f32.mrb[17].mxu0 }
 0x53c   :  { %v902_v47 = vpop.f32.mrb[18].mxu0 }
 0x53d   :  { %v957_v48 = vadd.f32 %v951_v34, %v900_v45  ;;  %v1827_v49 = vpop.f32.mrb[19].mxu0 }
 0x53f   :  { %v1694_v50 = vmul.f32 -1.442695, %v957_v48 }
 0x541   :  { %1964 = vpow2.f32 %v1694_v50 }
 0x542   :  { %v1026_v51 = vpop.f32.mrb[20].mxu0 }
 0x543   :  { %v1039_v52 = vadd.f32 %v1026_v51, %v2302_v60  ;;  %v1842_v53 = vpop.f32.mrb[21].mxu0  ;;  %v1032_v0 = vadd.f32 %v1026_v51, %v722_v63 }
 0x544   :  { %v1029_v54 = vpop.f32.mrb[22].mxu0 }
 0x545   :  { %v1047_v55 = vrot.slane %v1039_v52, %v2181_v10  ;;  %v1843_v56 = vpop.f32.mrb[23].mxu0  ;;  %v1697_v2 = vmul.f32 -1.442695, %v1032_v0 }
 0x547   :  { %1048 = vrot.lane.b32.xlu1 %v1047_v55, %s2066_s16 }
 0x54b   :  { %v1965_v57 = vpop.eup %1964 }
 0x54c   :  { %v961_v58 = vadd.f32 1.0, %v1965_v57 }
 0x54e   :  { %1966 = vrcp.f32 %v961_v58 }
 0x54f   :  { %1968 = vpow2.f32 %v1697_v2 }
 0x558   :  { %v1967_v61 = vpop.eup %1966 }
 0x559   :  { %v977_v62 = vmul.f32 %v1967_v61, %v975_v59  ;;  %v1969_v3 = vpop.eup %1968  ;;  %v984_v16 = vsub.f32 1.0, %v1967_v61  ;;  %v990_v18 = vmul.f32 0.0, %v1967_v61 }
 0x55a   :  { %v1036_v4 = vadd.f32 1.0, %v1969_v3 }
 0x55b   :  { %979 = vrot.lane.b32.xlu0 %v977_v62, %s2066_s16  ;;  %v707_v62 = vcombine.high %v2313_v7, %v2313_v7 }
 0x55c   :  { %1970 = vrcp.f32 %v1036_v4 }
 0x566   :  { %v1971_v5 = vpop.eup %1970 }
 0x567   :  { %v1058_v26 = vsub.f32 1.0, %v1971_v5  ;;  %v1064_v28 = vmul.f32 %v1971_v5, %v2361_v32 }
 0x5b9   :  { %v1049_v6 = vpop.permute.xlu1 %1048 }
 0x5ba   :  { %v1051_v8 = vmul.f32 %v1971_v5, %v1049_v6 }
 0x5bc   :  { %1053 = vrot.lane.b32.xlu1 %v1051_v8, %s2066_s16 }
 0x5cd   :  { %v980_v9 = vpop.permute.xlu0 %979 }
 0x5ce   :  { %v982_v12 = vadd.f32 %v980_v9, %v900_v45 }
 0x5d0   :  { %1972 = vtanh.f32 %v982_v12 }
 0x5da   :  { %v1973_v13 = vpop.eup %1972 }
 0x5db   :  { %986 = vrot.lane.b32.xlu0 %v1973_v13, %s2067_s25 }
 0x62e   :  { %v1054_v14 = vpop.permute.xlu1 %1053 }
 0x62f   :  { %v1056_v15 = vadd.f32 %v1054_v14, %v722_v63  ;;  %v2442_v63 = vrot.slane %v707_v62, %v2181_v10 }
 0x631   :  { %1974 = vtanh.f32 %v1056_v15 }
 0x63b   :  { %v1975_v11 = vpop.eup %1974 }
 0x63c   :  { %1060 = vrot.lane.b32.xlu1 %v1975_v11, %s2067_s25 }
 0x64d   :  { %v987_v17 = vpop.permute.xlu0 %986 }
 0x64e   :  { %v989_v19 = vmul.f32 %v987_v17, %v984_v16 }
 0x650   :  { %v2400_v20 = vadd.f32 %v990_v18, %v989_v19 }
 0x652   :  { %v1113_v21 = vpack.c.bf16 %v2400_v20, %v2400_v20 }
 0x654   :  { %1115 = vrot.lane.b32.xlu0 %v1113_v21, %s2067_s25 }
 0x6ae   :  { %v1061_v27 = vpop.permute.xlu1 %1060 }
 0x6af   :  { %v1063_v29 = vmul.f32 %v1061_v27, %v1058_v26 }
 0x6b1   :  { %v2406_v30 = vadd.f32 %v1064_v28, %v1063_v29 }
 0x6b3   :  { %v1066_v31 = vpack.c.bf16 %v2406_v30, %v2406_v30 }
 0x6b5   :  { %1068 = vrot.lane.b32.xlu1 %v1066_v31, %s2067_s25 }
 0x6c6   :  { %v1116_v33 = vpop.permute.xlu0 %1115 }
 0x6c7   :  { %1857 = vmatmul.mubr.msk.bf16.vlgmr.msra.gmra.mrb[24].mxu0 %vm662_vm4, %v1116_v33 }
 0x6c8   :  { %1869 = vmatpush3.bf16.msra.mxu0 %v2330_v23  ;;  %1872 = vmatprep.mubr.msk.bf16.mxu0 %vm2063_vm0, %v2062_v1 }
 0x6c9   :  { %1870 = vmatprep.subr.bf16.mxu0 %v2062_v1 }
 0x6cc   :  { %1871 = vmatpush3.bf16.msra.mxu0 %v2342_v25 }
 0x6cd   :  { %1884 = vmatprep.subr.bf16.mxu0 %v2062_v1 }
 0x727   :  { %v1069_v32 = vpop.permute.xlu1 %1068 }
 0x728   :  { %1849 = vmatmul.mubr.msk.bf16.vlgmr.msra.gmra.mrb[20].mxu1 %vm662_vm4, %v1069_v32 }
 0x729   :  { %1861 = vmatpush3.bf16.msra.mxu1 %v2271_v36  ;;  %1864 = vmatprep.mubr.msk.bf16.mxu1 %vm2063_vm0, %v2062_v1 }
 0x72a   :  { %1862 = vmatprep.subr.bf16.mxu1 %v2062_v1 }
 0x72d   :  { %1863 = vmatpush3.bf16.msra.mxu1 %v2277_v38 }
 0x72e   :  { %1876 = vmatprep.subr.bf16.mxu1 %v2062_v1 }
 0x730   :  { %1865 = vmatmul.mubr.msk.bf16.vlgmr.msra.gmra.mrb[24].mxu1 %vm662_vm4, %v1069_v32 }
 0x731   :  { %1877 = vmatpush3.bf16.msra.mxu1 %v2325_v22  ;;  %1880 = vmatprep.mubr.msk.bf16.mxu1 %vm2063_vm0, %v2062_v1 }
 0x732   :  { %1878 = vmatprep.subr.bf16.mxu1 %v2062_v1 }
 0x735   :  { %1879 = vmatpush3.bf16.msra.mxu1 %v2336_v24 }
 0x736   :  { %1892 = vmatprep.subr.bf16.mxu1 %v2062_v1 }
 0x79a   :  { %v1154_v34 = vpop.f32.mrb[24].mxu0 }
 0x79b   :  { %v1167_v35 = vadd.f32 %v1154_v34, %v2367_v40  ;;  %v1858_v37 = vpop.f32.mrb[25].mxu0 }
 0x79c   :  { %v1157_v39 = vpop.f32.mrb[26].mxu0 }
 0x79d   :  { %1169 = vrot.lane.b32.xlu0 %v1167_v35, %s2066_s16  ;;  %v1859_v41 = vpop.f32.mrb[27].mxu0 }
 0x7fb   :  { %v1107_v42 = vpop.f32.mrb[20].mxu1 }
 0x7fc   :  { %v1108_v44 = vadd.f32 %v2388_v43, %v1107_v42  ;;  %v1850_v45 = vpop.f32.mrb[21].mxu1 }
 0x7fd   :  { %v1110_v46 = vpop.f32.mrb[22].mxu1 }
 0x7fe   :  { %v1160_v47 = vadd.f32 %v1154_v34, %v1108_v44  ;;  %v1851_v48 = vpop.f32.mrb[23].mxu1 }
 0x800   :  { %v1700_v49 = vmul.f32 -1.442695, %v1160_v47 }
 0x802   :  { %1976 = vpow2.f32 %v1700_v49 }
 0x803   :  { %v1221_v50 = vpop.f32.mrb[24].mxu1 }
 0x804   :  { %v1234_v51 = vadd.f32 %v1221_v50, %v2302_v60  ;;  %v1866_v52 = vpop.f32.mrb[25].mxu1  ;;  %v1227_v0 = vadd.f32 %v1221_v50, %v2442_v63 }
 0x805   :  { %v1224_v53 = vpop.f32.mrb[26].mxu1 }
 0x806   :  { %v1242_v54 = vrot.slane %v1234_v51, %v2181_v10  ;;  %v1867_v55 = vpop.f32.mrb[27].mxu1  ;;  %v1702_v2 = vmul.f32 -1.442695, %v1227_v0 }
 0x808   :  { %1243 = vrot.lane.b32.xlu1 %v1242_v54, %s2066_s16  ;;  %v723_v54 = vcombine.high %v2442_v63, %v2442_v63 }
 0x80c   :  { %v1977_v56 = vpop.eup %1976 }
 0x80d   :  { %v1164_v57 = vadd.f32 1.0, %v1977_v56 }
 0x80f   :  { %1978 = vrcp.f32 %v1164_v57  ;;  %v1170_v59 = vpop.permute.xlu0 %1169 }
 0x810   :  { %1980 = vpow2.f32 %v1702_v2 }
 0x819   :  { %v1979_v58 = vpop.eup %1978 }
 0x81a   :  { %v1172_v61 = vmul.f32 %v1979_v58, %v1170_v59  ;;  %v1981_v3 = vpop.eup %1980  ;;  %v1179_v11 = vsub.f32 1.0, %v1979_v58  ;;  %v1185_v17 = vmul.f32 %v1979_v58, %v2400_v20 }
 0x81b   :  { %v1231_v4 = vadd.f32 1.0, %v1981_v3 }
 0x81c   :  { %1174 = vrot.lane.b32.xlu0 %v1172_v61, %s2066_s16 }
 0x81d   :  { %1982 = vrcp.f32 %v1231_v4 }
 0x827   :  { %v1983_v5 = vpop.eup %1982 }
 0x828   :  { %v1253_v26 = vsub.f32 1.0, %v1983_v5  ;;  %v1259_v28 = vmul.f32 %v1983_v5, %v2406_v30 }
 0x87a   :  { %v1244_v6 = vpop.permute.xlu1 %1243 }
 0x87b   :  { %v1246_v8 = vmul.f32 %v1983_v5, %v1244_v6 }
 0x87d   :  { %1248 = vrot.lane.b32.xlu1 %v1246_v8, %s2066_s16 }
 0x88e   :  { %v1175_v9 = vpop.permute.xlu0 %1174 }
 0x88f   :  { %v1177_v12 = vadd.f32 %v1175_v9, %v1108_v44 }
 0x891   :  { %1984 = vtanh.f32 %v1177_v12 }
 0x89b   :  { %v1985_v13 = vpop.eup %1984 }
 0x89c   :  { %1181 = vrot.lane.b32.xlu0 %v1985_v13, %s2067_s25 }
 0x8ef   :  { %v1249_v7 = vpop.permute.xlu1 %1248 }
 0x8f0   :  { %v1251_v14 = vadd.f32 %v1249_v7, %v2442_v63 }
 0x8f2   :  { %1986 = vtanh.f32 %v1251_v14 }
 0x8fc   :  { %v1987_v15 = vpop.eup %1986 }
 0x8fd   :  { %1255 = vrot.lane.b32.xlu1 %v1987_v15, %s2067_s25 }
 0x90e   :  { %v1182_v16 = vpop.permute.xlu0 %1181 }
 0x90f   :  { %v1184_v18 = vmul.f32 %v1182_v16, %v1179_v11 }
 0x911   :  { %v2450_v19 = vadd.f32 %v1185_v17, %v1184_v18 }
 0x913   :  { %v1308_v21 = vpack.c.bf16 %v2450_v19, %v2450_v19 }
 0x915   :  { %1310 = vrot.lane.b32.xlu0 %v1308_v21, %s2067_s25 }
 0x96f   :  { %v1256_v27 = vpop.permute.xlu1 %1255 }
 0x970   :  { %v1258_v29 = vmul.f32 %v1256_v27, %v1253_v26 }
 0x972   :  { %v2456_v31 = vadd.f32 %v1259_v28, %v1258_v29 }
 0x974   :  { %v1261_v33 = vpack.c.bf16 %v2456_v31, %v2456_v31 }
 0x976   :  { %1263 = vrot.lane.b32.xlu1 %v1261_v33, %s2067_s25 }
 0x987   :  { %v1311_v20 = vpop.permute.xlu0 %1310 }
 0x988   :  { %1881 = vmatmul.mubr.msk.bf16.vlgmr.msra.gmra.mrb[28].mxu1 %vm662_vm4, %v1311_v20 }
 0x989   :  { %1893 = vmatpush3.bf16.msra.mxu1 %v2330_v23  ;;  %1896 = vmatprep.mubr.msk.bf16.mxu1 %vm2063_vm0, %v2062_v1 }
 0x98a   :  { %1894 = vmatprep.subr.bf16.mxu1 %v2062_v1 }
 0x98d   :  { %1895 = vmatpush3.bf16.msra.mxu1 %v2342_v25 }
 0x9e8   :  { %v1264_v30 = vpop.permute.xlu1 %1263 }
 0x9e9   :  { %1873 = vmatmul.mubr.msk.bf16.vlgmr.msra.gmra.mrb[28].mxu0 %vm662_vm4, %v1264_v30 }
 0x9ea   :  { %1885 = vmatpush3.bf16.msra.mxu0 %v2271_v36  ;;  %1888 = vmatprep.mubr.msk.bf16.mxu0 %vm2063_vm0, %v2062_v1 }
 0x9eb   :  { %1886 = vmatprep.subr.bf16.mxu0 %v2062_v1 }
 0x9ee   :  { %1887 = vmatpush3.bf16.msra.mxu0 %v2277_v38 }
 0x9ef   :  { %1900 = vmatprep.subr.bf16.mxu0 %v2062_v1 }
 0x9f1   :  { %1889 = vmatmul.mubr.msk.bf16.vlgmr.msra.gmra.mrb[32].mxu0 %vm662_vm4, %v1264_v30 }
 0x9f2   :  { %1901 = vmatpush3.bf16.msra.mxu0 %v2325_v22  ;;  %1904 = vmatprep.mubr.msk.bf16.mxu0 %vm2063_vm0, %v2062_v1 }
 0x9f3   :  { %1902 = vmatprep.subr.bf16.mxu0 %v2062_v1 }
 0x9f6   :  { %1903 = vmatpush3.bf16.msra.mxu0 %v2336_v24 }
 0xa5b   :  { %v1349_v36 = vpop.f32.mrb[28].mxu1 }
 0xa5c   :  { %v1362_v23 = vadd.f32 %v1349_v36, %v2367_v40  ;;  %v1882_v25 = vpop.f32.mrb[29].mxu1 }
 0xa5d   :  { %v1352_v32 = vpop.f32.mrb[30].mxu1 }
 0xa5e   :  { %1364 = vrot.lane.b32.xlu0 %v1362_v23, %s2066_s16  ;;  %v1883_v38 = vpop.f32.mrb[31].mxu1 }
 0xabc   :  { %v1302_v34 = vpop.f32.mrb[28].mxu0 }
 0xabd   :  { %v1303_v35 = vadd.f32 %v2388_v43, %v1302_v34  ;;  %v1874_v37 = vpop.f32.mrb[29].mxu0 }
 0xabe   :  { %v1305_v22 = vpop.f32.mrb[30].mxu0  ;;  %v1578_v37 = vld [vmem:[%s2538_s13 + $0x8] sm:$0xff] }
 0xabf   :  { %v1355_v39 = vadd.f32 %v1349_v36, %v1303_v35  ;;  %v1875_v41 = vpop.f32.mrb[31].mxu0  ;;  %v1579_v22 = vld [vmem:[%s2538_s13 + $0x10] sm:$0xff] }
 0xac1   :  { %v1705_v42 = vmul.f32 -1.442695, %v1355_v39  ;;  %v2068_v39 = vmov 0.0|0.0  }
 0xac2   :  { %1919 = vmatprep.subr.bf16.mxu1 %v2068_v39 }
 0xac3   :  { %1988 = vpow2.f32 %v1705_v42  ;;  %v1580_v42 = vld [vmem:[%s2538_s13 + $0x18] sm:$0xff] }
 0xac4   :  { %v1416_v44 = vpop.f32.mrb[32].mxu0 }
 0xac5   :  { %v1429_v24 = vadd.f32 %v1416_v44, %v2302_v60  ;;  %v1890_v45 = vpop.f32.mrb[33].mxu0  ;;  %v1422_v55 = vadd.f32 %v1416_v44, %v723_v54  ;;  %v1923_v44 = vpack.c.bf16 %v1580_v42, %v1579_v22 }
 0xac6   :  { %v1419_v46 = vpop.f32.mrb[34].mxu0 }
 0xac7   :  { %v1437_v47 = vrot.slane %v1429_v24, %v2181_v10  ;;  %v1891_v48 = vpop.f32.mrb[35].mxu0  ;;  %v1707_v60 = vmul.f32 -1.442695, %v1422_v55 }
 0xac9   :  { %1438 = vrot.lane.b32.xlu1 %v1437_v47, %s2066_s16 }
 0xacd   :  { %v1989_v49 = vpop.eup %1988 }
 0xace   :  { %v1359_v50 = vadd.f32 1.0, %v1989_v49 }
 0xad0   :  { %1990 = vrcp.f32 %v1359_v50  ;;  %v1365_v52 = vpop.permute.xlu0 %1364 }
 0xad1   :  { %1992 = vpow2.f32 %v1707_v60 }
 0xada   :  { %v1991_v51 = vpop.eup %1990 }
 0xadb   :  { %v1367_v53 = vmul.f32 %v1991_v51, %v1365_v52  ;;  %v1993_v56 = vpop.eup %1992  ;;  %v1374_v4 = vsub.f32 1.0, %v1991_v51  ;;  %v1380_v6 = vmul.f32 %v1991_v51, %v2450_v19  ;;  %v1582_v51 = vstv %s2539_s14 }
 0xadc   :  { %v1426_v57 = vadd.f32 1.0, %v1993_v56 }
 0xadd   :  { %1369 = vrot.lane.b32.xlu0 %v1367_v53, %s2066_s16 }
 0xade   :  { %1994 = vrcp.f32 %v1426_v57 }
 0xae8   :  { %v1995_v10 = vpop.eup %1994 }
 0xae9   :  { %v1448_v13 = vsub.f32 1.0, %v1995_v10  ;;  %v1454_v14 = vmul.f32 %v1995_v10, %v2456_v31 }
 0xb3b   :  { %v1439_v58 = vpop.permute.xlu1 %1438 }
 0xb3c   :  { %v1441_v59 = vmul.f32 %v1995_v10, %v1439_v58 }
 0xb3e   :  { %1443 = vrot.lane.b32.xlu1 %v1441_v59, %s2066_s16 }
 0xb4f   :  { %v1370_v61 = vpop.permute.xlu0 %1369 }
 0xb50   :  { %v1372_v62 = vadd.f32 %v1370_v61, %v1303_v35 }
 0xb52   :  { %1996 = vtanh.f32 %v1372_v62 }
 0xb5c   :  { %v1997_v0 = vpop.eup %1996 }
 0xb5d   :  { %1376 = vrot.lane.b32.xlu0 %v1997_v0, %s2067_s25 }
 0xbb0   :  { %v1444_v2 = vpop.permute.xlu1 %1443 }
 0xbb1   :  { %v1446_v3 = vadd.f32 %v1444_v2, %v723_v54 }
 0xbb3   :  { %1998 = vtanh.f32 %v1446_v3 }
 0xbbd   :  { %v1999_v63 = vpop.eup %1998 }
 0xbbe   :  { %1450 = vrot.lane.b32.xlu1 %v1999_v63, %s2067_s25 }
 0xbcf   :  { %v1377_v5 = vpop.permute.xlu0 %1376 }
 0xbd0   :  { %v1379_v8 = vmul.f32 %v1377_v5, %v1374_v4 }
 0xbd2   :  { %v1381_v9 = vadd.f32 %v1380_v6, %v1379_v8 }
 0xbd4   :  { %v1503_v12 = vpack.c.bf16 %v1381_v9, %v1381_v9 }
 0xbd6   :  { %1505 = vrot.lane.b32.xlu0 %v1503_v12, %s2067_s25 }
 0xc30   :  { %v1451_v7 = vpop.permute.xlu1 %1450 }
 0xc31   :  { %v1453_v15 = vmul.f32 %v1451_v7, %v1448_v13 }
 0xc33   :  { %v1455_v11 = vadd.f32 %v1454_v14, %v1453_v15 }
 0xc35   :  { %v1456_v16 = vpack.c.bf16 %v1455_v11, %v1455_v11 }
 0xc37   :  { %1458 = vrot.lane.b32.xlu1 %v1456_v16, %s2067_s25 }
 0xc48   :  { %v1506_v17 = vpop.permute.xlu0 %1505 }
 0xc49   :  { %1905 = vmatmul.mubr.msk.bf16.vlgmr.msra.gmra.mrb[36].mxu0 %vm662_vm4, %v1506_v17 }
 0xca9   :  { %v1459_v18 = vpop.permute.xlu1 %1458 }
 0xcaa   :  { %1897 = vmatmul.mubr.msk.bf16.vlgmr.msra.gmra.mrb[32].mxu1 %vm662_vm4, %v1459_v18 }
 0xcab   :  { %1916 = vmatprep.mubr.msk.f32.mxu1 %vm2063_vm0, %v2062_v1 }
 0xd1c   :  { %v1544_v19 = vpop.f32.mrb[36].mxu0 }
 0xd1d   :  { %v1557_v21 = vadd.f32 %v1544_v19, %v2367_v40  ;;  %v1906_v26 = vpop.f32.mrb[37].mxu0 }
 0xd1e   :  { %v1547_v27 = vpop.f32.mrb[38].mxu0 }
 0xd1f   :  { %1559 = vrot.lane.b32.xlu0 %v1557_v21, %s2066_s16  ;;  %v1907_v28 = vpop.f32.mrb[39].mxu0 }
 0xd7d   :  { %v1497_v29 = vpop.f32.mrb[32].mxu1 }
 0xd7e   :  { %v1498_v31 = vadd.f32 %v2388_v43, %v1497_v29  ;;  %v1898_v33 = vpop.f32.mrb[33].mxu1  ;;  %v1577_v43 = vld [vmem:[%s2538_s13] sm:$0xff] }
 0xd7f   :  { %v1500_v20 = vpop.f32.mrb[34].mxu1  ;;  %v1920_v41 = vpack.c.bf16 %v1578_v37, %v1577_v43 }
 0xd80   :  { %v1550_v30 = vadd.f32 %v1544_v19, %v1498_v31  ;;  %v1899_v36 = vpop.f32.mrb[35].mxu1 }
 0xd81   :  { %1921 = vmatpush3.bf16.msra.mxu1 %v1920_v41 }
 0xd82   :  { %v1710_v23 = vmul.f32 -1.442695, %v1550_v30  ;;  %1922 = vmatprep.subr.bf16.mxu1 %v2068_v39 }
 0xd84   :  { %2000 = vpow2.f32 %v1710_v23 }
 0xd85   :  { %1924 = vmatpush3.bf16.msra.mxu1 %v1923_v44 }
 0xd8e   :  { %v2001_v25 = vpop.eup %2000 }
 0xd8f   :  { %v1554_v32 = vadd.f32 1.0, %v2001_v25 }
 0xd91   :  { %2002 = vrcp.f32 %v1554_v32  ;;  %v1560_v38 = vpop.permute.xlu0 %1559 }
 0xd9b   :  { %v2003_v1 = vpop.eup %2002 }
 0xd9c   :  { %v1562_v40 = vmul.f32 %v2003_v1, %v1560_v38  ;;  %v1569_v45 = vsub.f32 1.0, %v2003_v1  ;;  %v1575_v47 = vmul.f32 %v2003_v1, %v1381_v9 }
 0xd9e   :  { %1564 = vrot.lane.b32.xlu1 %v1562_v40, %s2066_s16 }
 0xe10   :  { %v1565_v34 = vpop.permute.xlu1 %1564 }
 0xe11   :  { %v1567_v35 = vadd.f32 %v1565_v34, %v1498_v31 }
 0xe13   :  { %2004 = vtanh.f32 %v1567_v35 }
 0xe1d   :  { %v2005_v24 = vpop.eup %2004 }
 0xe1e   :  { %1571 = vrot.lane.b32.xlu0 %v2005_v24, %s2067_s25 }
 0xe90   :  { %v1572_v46 = vpop.permute.xlu0 %1571 }
 0xe91   :  { %v1574_v48 = vmul.f32 %v1572_v46, %v1569_v45 }
 0xe93   :  { %v1576_v49 = vadd.f32 %v1575_v47, %v1574_v48 }
 0xe95   :  { %1584 = vrot.lane.b32.xlu1 %v1576_v49, %s2067_s25 }
 0xf07   :  { %v1585_v50 = vpop.permute.xlu1 %1584 }
 0xf08   :  { %1917 = vmatmul.mubr.msk.f32.vlgmr.msra.gmra.mrb[36].mxu1 %vm662_vm4, %v1585_v50 }
 0xfdb   :  { %v1654_v52 = vpop.f32.mrb[36].mxu1 }
 0xfdc   :  { %v1655_v53 = vadd.f32 %v1654_v52, %v1582_v51  ;;  %v1918_v54 = vpop.f32.mrb[37].mxu1 }
 0xfde   :  { %1659 = vst.msk [vmem:[%s2540_s15] sm:$0x3] %vm1658_vm5, %v1655_v53 }
 0xfdf   :  { %1664 = vsyncpa [#allocation4], 1 }
 0xfe0   :  { %1665 = vsyncpa [#allocation6], 1 }

</bundles_post_ra>
